<compile_context>
chip_gen: v7x
topology: tpu7x:2x2x1
jax: 0.10.0
libtpu: 0.0.40
codegen_flags: <defaults>
</compile_context>

<pallas_src>
import functools
import math

import jax
import jax.numpy as jnp
from jax.experimental import pallas as pl
from jax.experimental.pallas import tpu as pltpu


# ----------------------------- config ---------------------------------------
B = 2          # batch
T = 8          # sequence length (block_size)
C = 32         # n_embd
N_HEAD = 4     # n_head
N_LAYERS = 2   # n_transf_layers
LN_EPS = 1e-5
HD = C // N_HEAD


def _pad128(n):
    return ((n + 127) // 128) * 128


# Lane-aligned column offsets inside the packed slabs.
OFS_QKV = 0
OFS_AO = OFS_QKV + _pad128(3 * C)     # 128
OFS_FC = OFS_AO + _pad128(C)          # 256
W_COLS = OFS_FC + _pad128(4 * C)      # 384
OFS_PR = W_COLS                       # 384  (bias slab only)
B_COLS = OFS_PR + _pad128(C)          # 512


def _gelu_tanh(x):
    # GPT-2 "new gelu" (tanh approximation) -- used inside the kernel and the
    # pure-JAX reference so the comparison is exact.
    return 0.5 * x * (1.0 + jnp.tanh(
        math.sqrt(2.0 / math.pi) * (x + 0.044715 * x * x * x)))


# ----------------------------- Pallas kernel --------------------------------
def secondary_kernel(x_ref, w_in_ref, w_pr_ref, b_ref, o_ref, *,
                     n_layers, n_head, batch, seq):
    """All N_LAYERS blocks fused; activation stays resident the whole time.

    x_ref / o_ref : (B*T, C) flattened activations.
    w_in_ref      : (L, C, W_COLS)   packed [w_qkv' | w_attn_out | w_fc'].
    w_pr_ref      : (L, 4C, C)       MLP down projection.
    b_ref         : (L, 1, B_COLS)   packed biases (LN affine already folded in).
    """
    xf = x_ref[...]                         # (B*T, C)
    bt, c = xf.shape
    hd = c // n_head

    # ---- hoisted constants (built once, reused by every layer) -------------
    # Causal additive mask tiled over heads: row (h*T + q), col k.
    row = jax.lax.broadcasted_iota(jnp.int32, (seq, seq), 0)
    col = jax.lax.broadcasted_iota(jnp.int32, (seq, seq), 1)
    causal_add = jnp.where(row >= col, 0.0, -1e30).astype(jnp.float32)      # (T, T)
    causal_add = jnp.concatenate([causal_add] * n_head, axis=0)             # (nh*T, T)

    # Per-head channel masks (1, C); pure VPU multiplies, no lane slicing.
    lane = jax.lax.broadcasted_iota(jnp.int32, (1, c), 1)
    head_masks = [
        jnp.where((lane >= h * hd) & (lane < (h + 1) * hd), 1.0, 0.0)
        for h in range(n_head)
    ]

    def ln(v):  # affine-free LayerNorm (gamma/beta folded into the next matmul)
        mu = jnp.mean(v, axis=-1, keepdims=True)
        var = jnp.mean((v - mu) ** 2, axis=-1, keepdims=True)
        return (v - mu) * jax.lax.rsqrt(var + LN_EPS)

    for l in range(n_layers):               # static unroll; weights fully resident
        # Lane-tile-aligned ref views of the packed slabs (clean loads, no copies).
        w_qkv = w_in_ref[l, :, OFS_QKV:OFS_QKV + 3 * c]     # (C, 3C)  (LN1 + scale folded)
        w_ao = w_in_ref[l, :, OFS_AO:OFS_AO + c]            # (C, C)
        w_fc = w_in_ref[l, :, OFS_FC:OFS_FC + 4 * c]        # (C, 4C)  (LN2 folded)
        w_pr = w_pr_ref[l]                                  # (4C, C)
        b_qkv = b_ref[l, :, OFS_QKV:OFS_QKV + 3 * c]        # (1, 3C)
        b_ao = b_ref[l, :, OFS_AO:OFS_AO + c]               # (1, C)
        b_fc = b_ref[l, :, OFS_FC:OFS_FC + 4 * c]           # (1, 4C)
        b_pr = b_ref[l, :, OFS_PR:OFS_PR + c]               # (1, C)

        # ---- attention branch ----
        h = ln(xf)                                          # (BT, C)
        qkv = jnp.dot(h, w_qkv,
                      preferred_element_type=jnp.float32) + b_qkv      # (BT, 3C)
        qkv3 = qkv.reshape(batch, seq, 3 * c)
        q = qkv3[:, :, 0 * c:1 * c]                         # (B, T, C)  (pre-scaled)
        k = qkv3[:, :, 1 * c:2 * c]
        v = qkv3[:, :, 2 * c:3 * c]

        # Stack the per-head channel-masked queries along the row axis:
        # row (h*T + q) holds Q[b, q, :] with only head-h channels non-zero.
        qs = jnp.concatenate([q * m for m in head_masks], axis=1)      # (B, nh*T, C)

        # One batched score contraction for all heads (contracting full C is
        # correct because qs is zero outside head h's channels).
        s = jnp.einsum("brc,bkc->brk", qs, k,
                       preferred_element_type=jnp.float32)             # (B, nh*T, T)
        s = s + causal_add

        # Explicit softmax; reciprocal on the EUP slot.
        smax = jnp.max(s, axis=-1, keepdims=True)
        e = jnp.exp(s - smax)
        denom = jnp.sum(e, axis=-1, keepdims=True)
        att = e * pl.reciprocal(denom, approx=True)                    # (B, nh*T, T)

        # One batched value contraction for all heads, then per-head channel
        # selection by mask-and-add (row slices are sublane-tile aligned).
        ys = jnp.einsum("brk,bkc->brc", att, v,
                        preferred_element_type=jnp.float32)            # (B, nh*T, C)
        y = head_masks[0] * ys[:, 0:seq, :]
        for hix in range(1, n_head):
            y = y + head_masks[hix] * ys[:, hix * seq:(hix + 1) * seq, :]
        y = y.reshape(bt, c)                                           # (BT, C)

        xf = xf + jnp.dot(y, w_ao,
                          preferred_element_type=jnp.float32) + b_ao   # residual 1

        # ---- MLP branch ----
        h2 = ln(xf)
        f = jnp.dot(h2, w_fc, preferred_element_type=jnp.float32) + b_fc
        f = _gelu_tanh(f)
        f = jnp.dot(f, w_pr, preferred_element_type=jnp.float32) + b_pr
        xf = xf + f                                                    # residual 2

    o_ref[...] = xf                          # single writeback after the last layer


# ----------------------------- host-side fold & pack ------------------------
def fold_and_pack(layer_params):
    """Fold LN affine + attention scale into weights, pack into 3 slabs.

    gamma scales W along the input (row) axis; beta maps through W into the
    bias (beta @ W + b); 1/sqrt(head_dim) is folded into the Q third of w/b_qkv.
    """
    scale = 1.0 / math.sqrt(HD)
    w_in_l, w_pr_l, b_l = [], [], []
    for p in layer_params:
        g1 = p["ln1_g"].reshape(C)
        be1 = p["ln1_b"].reshape(C)
        g2 = p["ln2_g"].reshape(C)
        be2 = p["ln2_b"].reshape(C)

        w_qkv = p["w_qkv"] * g1[:, None]
        b_qkv = p["b_qkv"].reshape(3 * C) + be1 @ p["w_qkv"]
        w_qkv = w_qkv.at[:, :C].multiply(scale)          # fold 1/sqrt(hd) into Q
        b_qkv = b_qkv.at[:C].multiply(scale)

        w_fc = p["w_fc"] * g2[:, None]
        b_fc = p["b_fc"].reshape(4 * C) + be2 @ p["w_fc"]

        w_in = jnp.zeros((C, W_COLS), jnp.float32)
        w_in = w_in.at[:, OFS_QKV:OFS_QKV + 3 * C].set(w_qkv)
        w_in = w_in.at[:, OFS_AO:OFS_AO + C].set(p["w_ao"])
        w_in = w_in.at[:, OFS_FC:OFS_FC + 4 * C].set(w_fc)

        bias = jnp.zeros((1, B_COLS), jnp.float32)
        bias = bias.at[0, OFS_QKV:OFS_QKV + 3 * C].set(b_qkv)
        bias = bias.at[0, OFS_AO:OFS_AO + C].set(p["b_ao"].reshape(C))
        bias = bias.at[0, OFS_FC:OFS_FC + 4 * C].set(b_fc)
        bias = bias.at[0, OFS_PR:OFS_PR + C].set(p["b_pr"].reshape(C))

        w_in_l.append(w_in)
        w_pr_l.append(p["w_pr"])
        b_l.append(bias)
    return jnp.stack(w_in_l), jnp.stack(w_pr_l), jnp.stack(b_l)


@jax.jit
def secondary_node_forward(x, w_in, w_pr, bias):
    """SecondaryNode.forward: all Blocks applied inside one pallas_call."""
    b, t, c = x.shape
    xf = x.reshape(b * t, c)                 # free reshape outside the kernel

    kernel = functools.partial(secondary_kernel, n_layers=w_in.shape[0],
                               n_head=N_HEAD, batch=b, seq=t)
    # Gridless: activations + packed weights (~130 KB) resident in VMEM for the
    # single invocation; explicit VMEM specs make that assumption auditable.
    vmem = pl.BlockSpec(memory_space=pltpu.MemorySpace.VMEM)
    out = pl.pallas_call(
        kernel,
        out_shape=jax.ShapeDtypeStruct((b * t, c), x.dtype),
        in_specs=[vmem, vmem, vmem, vmem],
        out_specs=vmem,
    )(xf, w_in, w_pr, bias)
    return out.reshape(b, t, c)


# ----------------------------- pure-JAX reference ----------------------------
def _ref_block(x, p):
    def ln(v, g, b):
        mu = jnp.mean(v, axis=-1, keepdims=True)
        var = jnp.mean((v - mu) ** 2, axis=-1, keepdims=True)
        return (v - mu) / jnp.sqrt(var + LN_EPS) * g + b

    h = ln(x, p["ln1_g"], p["ln1_b"])
    qkv = h @ p["w_qkv"] + p["b_qkv"]
    q, k, v = jnp.split(qkv, 3, axis=-1)

    def split_heads(a):  # (B,T,C) -> (B,nh,T,hd)
        return a.reshape(B, T, N_HEAD, HD).transpose(0, 2, 1, 3)

    q, k, v = split_heads(q), split_heads(k), split_heads(v)
    att = jnp.einsum("bhtd,bhsd->bhts", q, k) / math.sqrt(HD)
    mask = jnp.tril(jnp.ones((T, T), bool))
    att = jnp.where(mask, att, -jnp.inf)
    att = jax.nn.softmax(att, axis=-1)
    y = jnp.einsum("bhts,bhsd->bhtd", att, v)
    y = y.transpose(0, 2, 1, 3).reshape(B, T, C)
    x = x + (y @ p["w_ao"] + p["b_ao"])

    h2 = ln(x, p["ln2_g"], p["ln2_b"])
    f = _gelu_tanh(h2 @ p["w_fc"] + p["b_fc"])
    return x + (f @ p["w_pr"] + p["b_pr"])


def _ref_forward(x, layer_params):
    for p in layer_params:
        x = _ref_block(x, p)
    return x


# ----------------------------- param init -----------------------------------
def init_layer_params(key):
    ks = jax.random.split(key, 12)
    n = jax.random.normal
    # Non-trivial LN affine params and biases so the host-side folding is
    # actually exercised by the correctness check.
    return {
        "ln1_g": 1.0 + 0.1 * n(ks[0], (1, C), jnp.float32),
        "ln1_b": 0.1 * n(ks[1], (1, C), jnp.float32),
        "w_qkv": 0.02 * n(ks[2], (C, 3 * C), jnp.float32),
        "b_qkv": 0.02 * n(ks[3], (1, 3 * C), jnp.float32),
        "w_ao": 0.02 * n(ks[4], (C, C), jnp.float32),
        "b_ao": 0.02 * n(ks[5], (1, C), jnp.float32),
        "ln2_g": 1.0 + 0.1 * n(ks[6], (1, C), jnp.float32),
        "ln2_b": 0.1 * n(ks[7], (1, C), jnp.float32),
        "w_fc": 0.02 * n(ks[8], (C, 4 * C), jnp.float32),
        "b_fc": 0.02 * n(ks[9], (1, 4 * C), jnp.float32),
        "w_pr": 0.02 * n(ks[10], (4 * C, C), jnp.float32),
        "b_pr": 0.02 * n(ks[11], (1, C), jnp.float32),
    }


if __name__ == "__main__":
    key = jax.random.PRNGKey(0)
    key, xkey = jax.random.split(key)
    x = jax.random.normal(xkey, (B, T, C), jnp.float32)

    layer_keys = jax.random.split(key, N_LAYERS)
    layer_params = [init_layer_params(k) for k in layer_keys]
    w_in, w_pr, bias = fold_and_pack(layer_params)

    out = secondary_node_forward(x, w_in, w_pr, bias)
    out = jax.block_until_ready(out)

    ref = _ref_forward(x, layer_params)
    assert out.shape == (B, T, C)
    # Only non-exact op vs the reference is the EUP approx reciprocal in the
    # softmax; its error is orders of magnitude below this tolerance here.
    err = float(jnp.max(jnp.abs(out - ref)))
    assert jnp.allclose(out, ref, atol=5e-4, rtol=5e-4), f"mismatch vs reference (max |err|={err})"
    print("KERNEL_OK")
</pallas_src>

<mosaic_0001>
module attributes {stable_mosaic.version = 11 : i64} {
  func.func @secondary_kernel(%arg0: memref<16x32xf32, #tpu.memory_space<vmem>>, %arg1: memref<2x32x384xf32, #tpu.memory_space<vmem>>, %arg2: memref<2x128x32xf32, #tpu.memory_space<vmem>>, %arg3: memref<2x1x512xf32, #tpu.memory_space<vmem>>, %arg4: memref<16x32xf32, #tpu.memory_space<vmem>>) attributes {dimension_semantics = [], scalar_prefetch = 0 : i64, scratch_operands = 0 : i64, tpu.core_type = #tpu.core_type<tc>} {
    %c0 = arith.constant 0 : index
    %c0_0 = arith.constant 0 : index
    %0 = vector.load %arg0[%c0, %c0_0] : memref<16x32xf32, #tpu.memory_space<vmem>>, vector<16x32xf32>
    %1 = tpu.iota {dimensions = array<i32: 0>} : vector<8x8xi32>
    %2 = tpu.iota {dimensions = array<i32: 1>} : vector<8x8xi32>
    %3 = arith.cmpi sge, %1, %2 : vector<8x8xi32>
    %cst = arith.constant 0.000000e+00 : f32
    %cst_1 = arith.constant -1.000000e+30 : f32
    %4 = vector.broadcast %cst : f32 to vector<8x8xf32>
    %5 = vector.broadcast %cst_1 : f32 to vector<8x8xf32>
    %6 = arith.select %3, %4, %5 : vector<8x8xi1>, vector<8x8xf32>
    %7 = tpu.concatenate %6, %6, %6, %6 in 0 : vector<8x8xf32>, vector<8x8xf32>, vector<8x8xf32>, vector<8x8xf32> -> vector<32x8xf32>
    %8 = tpu.iota {dimensions = array<i32: 1>} : vector<1x32xi32>
    %c0_i32 = arith.constant 0 : i32
    %9 = vector.broadcast %c0_i32 : i32 to vector<1x32xi32>
    %10 = arith.cmpi sge, %8, %9 : vector<1x32xi32>
    %c8_i32 = arith.constant 8 : i32
    %11 = vector.broadcast %c8_i32 : i32 to vector<1x32xi32>
    %12 = arith.cmpi slt, %8, %11 : vector<1x32xi32>
    %13 = arith.andi %10, %12 : vector<1x32xi1>
    %cst_2 = arith.constant 1.000000e+00 : f32
    %cst_3 = arith.constant 0.000000e+00 : f32
    %14 = vector.broadcast %cst_2 : f32 to vector<1x32xf32>
    %15 = vector.broadcast %cst_3 : f32 to vector<1x32xf32>
    %16 = arith.select %13, %14, %15 : vector<1x32xi1>, vector<1x32xf32>
    %c8_i32_4 = arith.constant 8 : i32
    %17 = vector.broadcast %c8_i32_4 : i32 to vector<1x32xi32>
    %18 = arith.cmpi sge, %8, %17 : vector<1x32xi32>
    %c16_i32 = arith.constant 16 : i32
    %19 = vector.broadcast %c16_i32 : i32 to vector<1x32xi32>
    %20 = arith.cmpi slt, %8, %19 : vector<1x32xi32>
    %21 = arith.andi %18, %20 : vector<1x32xi1>
    %cst_5 = arith.constant 1.000000e+00 : f32
    %cst_6 = arith.constant 0.000000e+00 : f32
    %22 = vector.broadcast %cst_5 : f32 to vector<1x32xf32>
    %23 = vector.broadcast %cst_6 : f32 to vector<1x32xf32>
    %24 = arith.select %21, %22, %23 : vector<1x32xi1>, vector<1x32xf32>
    %c16_i32_7 = arith.constant 16 : i32
    %25 = vector.broadcast %c16_i32_7 : i32 to vector<1x32xi32>
    %26 = arith.cmpi sge, %8, %25 : vector<1x32xi32>
    %c24_i32 = arith.constant 24 : i32
    %27 = vector.broadcast %c24_i32 : i32 to vector<1x32xi32>
    %28 = arith.cmpi slt, %8, %27 : vector<1x32xi32>
    %29 = arith.andi %26, %28 : vector<1x32xi1>
    %cst_8 = arith.constant 1.000000e+00 : f32
    %cst_9 = arith.constant 0.000000e+00 : f32
    %30 = vector.broadcast %cst_8 : f32 to vector<1x32xf32>
    %31 = vector.broadcast %cst_9 : f32 to vector<1x32xf32>
    %32 = arith.select %29, %30, %31 : vector<1x32xi1>, vector<1x32xf32>
    %c24_i32_10 = arith.constant 24 : i32
    %33 = vector.broadcast %c24_i32_10 : i32 to vector<1x32xi32>
    %34 = arith.cmpi sge, %8, %33 : vector<1x32xi32>
    %c32_i32 = arith.constant 32 : i32
    %35 = vector.broadcast %c32_i32 : i32 to vector<1x32xi32>
    %36 = arith.cmpi slt, %8, %35 : vector<1x32xi32>
    %37 = arith.andi %34, %36 : vector<1x32xi1>
    %cst_11 = arith.constant 1.000000e+00 : f32
    %cst_12 = arith.constant 0.000000e+00 : f32
    %38 = vector.broadcast %cst_11 : f32 to vector<1x32xf32>
    %39 = vector.broadcast %cst_12 : f32 to vector<1x32xf32>
    %40 = arith.select %37, %38, %39 : vector<1x32xi1>, vector<1x32xf32>
    %c0_13 = arith.constant 0 : index
    %c0_14 = arith.constant 0 : index
    %c0_15 = arith.constant 0 : index
    %41 = vector.load %arg1[%c0_13, %c0_14, %c0_15] : memref<2x32x384xf32, #tpu.memory_space<vmem>>, vector<1x32x96xf32>
    %42 = vector.shape_cast %41 : vector<1x32x96xf32> to vector<32x96xf32>
    %c0_16 = arith.constant 0 : index
    %c0_17 = arith.constant 0 : index
    %c128 = arith.constant 128 : index
    %43 = vector.load %arg1[%c0_16, %c0_17, %c128] : memref<2x32x384xf32, #tpu.memory_space<vmem>>, vector<1x32x32xf32>
    %44 = vector.shape_cast %43 : vector<1x32x32xf32> to vector<32x32xf32>
    %c0_18 = arith.constant 0 : index
    %c0_19 = arith.constant 0 : index
    %c256 = arith.constant 256 : index
    %45 = vector.load %arg1[%c0_18, %c0_19, %c256] : memref<2x32x384xf32, #tpu.memory_space<vmem>>, vector<1x32x128xf32>
    %46 = vector.shape_cast %45 : vector<1x32x128xf32> to vector<32x128xf32>
    %c0_20 = arith.constant 0 : index
    %c0_21 = arith.constant 0 : index
    %c0_22 = arith.constant 0 : index
    %47 = vector.load %arg2[%c0_20, %c0_21, %c0_22] : memref<2x128x32xf32, #tpu.memory_space<vmem>>, vector<1x128x32xf32>
    %48 = vector.shape_cast %47 : vector<1x128x32xf32> to vector<128x32xf32>
    %c0_23 = arith.constant 0 : index
    %c0_24 = arith.constant 0 : index
    %c0_25 = arith.constant 0 : index
    %49 = vector.load %arg3[%c0_23, %c0_24, %c0_25] : memref<2x1x512xf32, #tpu.memory_space<vmem>>, vector<1x1x96xf32>
    %50 = vector.shape_cast %49 : vector<1x1x96xf32> to vector<1x96xf32>
    %c0_26 = arith.constant 0 : index
    %c0_27 = arith.constant 0 : index
    %c128_28 = arith.constant 128 : index
    %51 = vector.load %arg3[%c0_26, %c0_27, %c128_28] : memref<2x1x512xf32, #tpu.memory_space<vmem>>, vector<1x1x32xf32>
    %52 = vector.shape_cast %51 : vector<1x1x32xf32> to vector<1x32xf32>
    %c0_29 = arith.constant 0 : index
    %c0_30 = arith.constant 0 : index
    %c256_31 = arith.constant 256 : index
    %53 = vector.load %arg3[%c0_29, %c0_30, %c256_31] : memref<2x1x512xf32, #tpu.memory_space<vmem>>, vector<1x1x128xf32>
    %54 = vector.shape_cast %53 : vector<1x1x128xf32> to vector<1x128xf32>
    %c0_32 = arith.constant 0 : index
    %c0_33 = arith.constant 0 : index
    %c384 = arith.constant 384 : index
    %55 = vector.load %arg3[%c0_32, %c0_33, %c384] : memref<2x1x512xf32, #tpu.memory_space<vmem>>, vector<1x1x32xf32>
    %56 = vector.shape_cast %55 : vector<1x1x32xf32> to vector<1x32xf32>
    %cst_34 = arith.constant dense<0.000000e+00> : vector<16xf32>
    %57 = vector.multi_reduction <add>, %0, %cst_34 [1] : vector<16x32xf32> to vector<16xf32>
    %58 = vector.shape_cast %57 : vector<16xf32> to vector<16x1xf32>
    %cst_35 = arith.constant 3.200000e+01 : f32
    %59 = vector.broadcast %cst_35 : f32 to vector<16x1xf32>
    %60 = arith.divf %58, %59 : vector<16x1xf32>
    %61 = vector.broadcast %60 : vector<16x1xf32> to vector<16x32xf32>
    %62 = arith.subf %0, %61 : vector<16x32xf32>
    %63 = arith.mulf %62, %62 : vector<16x32xf32>
    %cst_36 = arith.constant dense<0.000000e+00> : vector<16xf32>
    %64 = vector.multi_reduction <add>, %63, %cst_36 [1] : vector<16x32xf32> to vector<16xf32>
    %65 = vector.shape_cast %64 : vector<16xf32> to vector<16x1xf32>
    %cst_37 = arith.constant 3.200000e+01 : f32
    %66 = vector.broadcast %cst_37 : f32 to vector<16x1xf32>
    %67 = arith.divf %65, %66 : vector<16x1xf32>
    %68 = vector.broadcast %60 : vector<16x1xf32> to vector<16x32xf32>
    %69 = arith.subf %0, %68 : vector<16x32xf32>
    %cst_38 = arith.constant 9.99999974E-6 : f32
    %70 = vector.broadcast %cst_38 : f32 to vector<16x1xf32>
    %71 = arith.addf %67, %70 : vector<16x1xf32>
    %72 = math.rsqrt %71 : vector<16x1xf32>
    %73 = vector.broadcast %72 : vector<16x1xf32> to vector<16x32xf32>
    %74 = arith.mulf %69, %73 : vector<16x32xf32>
    %cst_39 = arith.constant dense<0.000000e+00> : vector<16x96xf32>
    %75 = tpu.matmul %74, %42, %cst_39 {dimension_numbers = #tpu.dot_dimension_numbers<[1], [0], [0], [1], [0, 0, 1, 1], [], []>} : vector<16x32xf32>, vector<32x96xf32>, vector<16x96xf32> -> vector<16x96xf32>
    %76 = vector.broadcast %50 : vector<1x96xf32> to vector<16x96xf32>
    %77 = arith.addf %75, %76 : vector<16x96xf32>
    %78 = vector.shape_cast %77 : vector<16x96xf32> to vector<2x8x96xf32>
    %79 = vector.extract_strided_slice %78 {offsets = [0, 0, 0], sizes = [2, 8, 32], strides = [1, 1, 1]} : vector<2x8x96xf32> to vector<2x8x32xf32>
    %80 = vector.extract_strided_slice %78 {offsets = [0, 0, 32], sizes = [2, 8, 32], strides = [1, 1, 1]} : vector<2x8x96xf32> to vector<2x8x32xf32>
    %81 = vector.extract_strided_slice %78 {offsets = [0, 0, 64], sizes = [2, 8, 32], strides = [1, 1, 1]} : vector<2x8x96xf32> to vector<2x8x32xf32>
    %82 = vector.shape_cast %16 : vector<1x32xf32> to vector<1x1x32xf32>
    %83 = vector.broadcast %82 : vector<1x1x32xf32> to vector<2x8x32xf32>
    %84 = arith.mulf %79, %83 : vector<2x8x32xf32>
    %85 = vector.shape_cast %24 : vector<1x32xf32> to vector<1x1x32xf32>
    %86 = vector.broadcast %85 : vector<1x1x32xf32> to vector<2x8x32xf32>
    %87 = arith.mulf %79, %86 : vector<2x8x32xf32>
    %88 = vector.shape_cast %32 : vector<1x32xf32> to vector<1x1x32xf32>
    %89 = vector.broadcast %88 : vector<1x1x32xf32> to vector<2x8x32xf32>
    %90 = arith.mulf %79, %89 : vector<2x8x32xf32>
    %91 = vector.shape_cast %40 : vector<1x32xf32> to vector<1x1x32xf32>
    %92 = vector.broadcast %91 : vector<1x1x32xf32> to vector<2x8x32xf32>
    %93 = arith.mulf %79, %92 : vector<2x8x32xf32>
    %94 = tpu.concatenate %84, %87, %90, %93 in 1 : vector<2x8x32xf32>, vector<2x8x32xf32>, vector<2x8x32xf32>, vector<2x8x32xf32> -> vector<2x32x32xf32>
    "tpu.trace_start"() <{level = 10 : i32, message = "brc,bkc->brk"}> : () -> ()
    %cst_40 = arith.constant dense<0.000000e+00> : vector<2x32x8xf32>
    %95 = tpu.matmul %94, %80, %cst_40 {dimension_numbers = #tpu.dot_dimension_numbers<[2], [2], [1], [1], [0, 0, 0, 1, 1, 1], [0], [0]>} : vector<2x32x32xf32>, vector<2x8x32xf32>, vector<2x32x8xf32> -> vector<2x32x8xf32>
    "tpu.trace_stop"() : () -> ()
    %96 = vector.shape_cast %7 : vector<32x8xf32> to vector<1x32x8xf32>
    %97 = vector.broadcast %96 : vector<1x32x8xf32> to vector<2x32x8xf32>
    %98 = arith.addf %95, %97 : vector<2x32x8xf32>
    %cst_41 = arith.constant dense<0xFF800000> : vector<2x32xf32>
    %99 = vector.multi_reduction <maximumf>, %98, %cst_41 [2] : vector<2x32x8xf32> to vector<2x32xf32>
    %100 = vector.shape_cast %99 : vector<2x32xf32> to vector<2x32x1xf32>
    %101 = vector.broadcast %100 : vector<2x32x1xf32> to vector<2x32x8xf32>
    %102 = arith.subf %98, %101 : vector<2x32x8xf32>
    %103 = math.exp %102 : vector<2x32x8xf32>
    %cst_42 = arith.constant dense<0.000000e+00> : vector<2x32xf32>
    %104 = vector.multi_reduction <add>, %103, %cst_42 [2] : vector<2x32x8xf32> to vector<2x32xf32>
    %105 = vector.shape_cast %104 : vector<2x32xf32> to vector<2x32x1xf32>
    %106 = tpu.reciprocal %105 {approx = true} : vector<2x32x1xf32> -> vector<2x32x1xf32>
    %107 = vector.broadcast %106 : vector<2x32x1xf32> to vector<2x32x8xf32>
    %108 = arith.mulf %103, %107 : vector<2x32x8xf32>
    "tpu.trace_start"() <{level = 10 : i32, message = "brk,bkc->brc"}> : () -> ()
    %cst_43 = arith.constant dense<0.000000e+00> : vector<2x32x32xf32>
    %109 = tpu.matmul %108, %81, %cst_43 {dimension_numbers = #tpu.dot_dimension_numbers<[2], [1], [1], [2], [0, 0, 0, 1, 1, 2], [0], [0]>} : vector<2x32x8xf32>, vector<2x8x32xf32>, vector<2x32x32xf32> -> vector<2x32x32xf32>
    "tpu.trace_stop"() : () -> ()
    %110 = vector.extract_strided_slice %109 {offsets = [0, 0, 0], sizes = [2, 8, 32], strides = [1, 1, 1]} : vector<2x32x32xf32> to vector<2x8x32xf32>
    %111 = vector.shape_cast %16 : vector<1x32xf32> to vector<1x1x32xf32>
    %112 = vector.broadcast %111 : vector<1x1x32xf32> to vector<2x8x32xf32>
    %113 = arith.mulf %112, %110 : vector<2x8x32xf32>
    %114 = vector.extract_strided_slice %109 {offsets = [0, 8, 0], sizes = [2, 8, 32], strides = [1, 1, 1]} : vector<2x32x32xf32> to vector<2x8x32xf32>
    %115 = vector.shape_cast %24 : vector<1x32xf32> to vector<1x1x32xf32>
    %116 = vector.broadcast %115 : vector<1x1x32xf32> to vector<2x8x32xf32>
    %117 = arith.mulf %116, %114 : vector<2x8x32xf32>
    %118 = arith.addf %113, %117 : vector<2x8x32xf32>
    %119 = vector.extract_strided_slice %109 {offsets = [0, 16, 0], sizes = [2, 8, 32], strides = [1, 1, 1]} : vector<2x32x32xf32> to vector<2x8x32xf32>
    %120 = vector.shape_cast %32 : vector<1x32xf32> to vector<1x1x32xf32>
    %121 = vector.broadcast %120 : vector<1x1x32xf32> to vector<2x8x32xf32>
    %122 = arith.mulf %121, %119 : vector<2x8x32xf32>
    %123 = arith.addf %118, %122 : vector<2x8x32xf32>
    %124 = vector.extract_strided_slice %109 {offsets = [0, 24, 0], sizes = [2, 8, 32], strides = [1, 1, 1]} : vector<2x32x32xf32> to vector<2x8x32xf32>
    %125 = vector.shape_cast %40 : vector<1x32xf32> to vector<1x1x32xf32>
    %126 = vector.broadcast %125 : vector<1x1x32xf32> to vector<2x8x32xf32>
    %127 = arith.mulf %126, %124 : vector<2x8x32xf32>
    %128 = arith.addf %123, %127 : vector<2x8x32xf32>
    %129 = vector.shape_cast %128 : vector<2x8x32xf32> to vector<16x32xf32>
    %cst_44 = arith.constant dense<0.000000e+00> : vector<16x32xf32>
    %130 = tpu.matmul %129, %44, %cst_44 {dimension_numbers = #tpu.dot_dimension_numbers<[1], [0], [0], [1], [0, 0, 1, 1], [], []>} : vector<16x32xf32>, vector<32x32xf32>, vector<16x32xf32> -> vector<16x32xf32>
    %131 = arith.addf %0, %130 : vector<16x32xf32>
    %132 = vector.broadcast %52 : vector<1x32xf32> to vector<16x32xf32>
    %133 = arith.addf %131, %132 : vector<16x32xf32>
    %cst_45 = arith.constant dense<0.000000e+00> : vector<16xf32>
    %134 = vector.multi_reduction <add>, %133, %cst_45 [1] : vector<16x32xf32> to vector<16xf32>
    %135 = vector.shape_cast %134 : vector<16xf32> to vector<16x1xf32>
    %cst_46 = arith.constant 3.200000e+01 : f32
    %136 = vector.broadcast %cst_46 : f32 to vector<16x1xf32>
    %137 = arith.divf %135, %136 : vector<16x1xf32>
    %138 = vector.broadcast %137 : vector<16x1xf32> to vector<16x32xf32>
    %139 = arith.subf %133, %138 : vector<16x32xf32>
    %140 = arith.mulf %139, %139 : vector<16x32xf32>
    %cst_47 = arith.constant dense<0.000000e+00> : vector<16xf32>
    %141 = vector.multi_reduction <add>, %140, %cst_47 [1] : vector<16x32xf32> to vector<16xf32>
    %142 = vector.shape_cast %141 : vector<16xf32> to vector<16x1xf32>
    %cst_48 = arith.constant 3.200000e+01 : f32
    %143 = vector.broadcast %cst_48 : f32 to vector<16x1xf32>
    %144 = arith.divf %142, %143 : vector<16x1xf32>
    %145 = vector.broadcast %137 : vector<16x1xf32> to vector<16x32xf32>
    %146 = arith.subf %133, %145 : vector<16x32xf32>
    %cst_49 = arith.constant 9.99999974E-6 : f32
    %147 = vector.broadcast %cst_49 : f32 to vector<16x1xf32>
    %148 = arith.addf %144, %147 : vector<16x1xf32>
    %149 = math.rsqrt %148 : vector<16x1xf32>
    %150 = vector.broadcast %149 : vector<16x1xf32> to vector<16x32xf32>
    %151 = arith.mulf %146, %150 : vector<16x32xf32>
    %cst_50 = arith.constant dense<0.000000e+00> : vector<16x128xf32>
    %152 = tpu.matmul %151, %46, %cst_50 {dimension_numbers = #tpu.dot_dimension_numbers<[1], [0], [0], [1], [0, 0, 1, 1], [], []>} : vector<16x32xf32>, vector<32x128xf32>, vector<16x128xf32> -> vector<16x128xf32>
    %153 = vector.broadcast %54 : vector<1x128xf32> to vector<16x128xf32>
    %154 = arith.addf %152, %153 : vector<16x128xf32>
    %cst_51 = arith.constant 5.000000e-01 : f32
    %155 = vector.broadcast %cst_51 : f32 to vector<16x128xf32>
    %156 = arith.mulf %155, %154 : vector<16x128xf32>
    %cst_52 = arith.constant 4.471500e-02 : f32
    %157 = vector.broadcast %cst_52 : f32 to vector<16x128xf32>
    %158 = arith.mulf %157, %154 : vector<16x128xf32>
    %159 = arith.mulf %158, %154 : vector<16x128xf32>
    %160 = arith.mulf %159, %154 : vector<16x128xf32>
    %161 = arith.addf %154, %160 : vector<16x128xf32>
    %cst_53 = arith.constant 0.797884583 : f32
    %162 = vector.broadcast %cst_53 : f32 to vector<16x128xf32>
    %163 = arith.mulf %162, %161 : vector<16x128xf32>
    %164 = math.tanh %163 : vector<16x128xf32>
    %cst_54 = arith.constant 1.000000e+00 : f32
    %165 = vector.broadcast %cst_54 : f32 to vector<16x128xf32>
    %166 = arith.addf %165, %164 : vector<16x128xf32>
    %167 = arith.mulf %156, %166 : vector<16x128xf32>
    %cst_55 = arith.constant dense<0.000000e+00> : vector<16x32xf32>
    %168 = tpu.matmul %167, %48, %cst_55 {dimension_numbers = #tpu.dot_dimension_numbers<[1], [0], [0], [1], [0, 0, 1, 1], [], []>} : vector<16x128xf32>, vector<128x32xf32>, vector<16x32xf32> -> vector<16x32xf32>
    %169 = vector.broadcast %56 : vector<1x32xf32> to vector<16x32xf32>
    %170 = arith.addf %168, %169 : vector<16x32xf32>
    %171 = arith.addf %133, %170 : vector<16x32xf32>
    %c1 = arith.constant 1 : index
    %c0_56 = arith.constant 0 : index
    %c0_57 = arith.constant 0 : index
    %172 = vector.load %arg1[%c1, %c0_56, %c0_57] : memref<2x32x384xf32, #tpu.memory_space<vmem>>, vector<1x32x96xf32>
    %173 = vector.shape_cast %172 : vector<1x32x96xf32> to vector<32x96xf32>
    %c1_58 = arith.constant 1 : index
    %c0_59 = arith.constant 0 : index
    %c128_60 = arith.constant 128 : index
    %174 = vector.load %arg1[%c1_58, %c0_59, %c128_60] : memref<2x32x384xf32, #tpu.memory_space<vmem>>, vector<1x32x32xf32>
    %175 = vector.shape_cast %174 : vector<1x32x32xf32> to vector<32x32xf32>
    %c1_61 = arith.constant 1 : index
    %c0_62 = arith.constant 0 : index
    %c256_63 = arith.constant 256 : index
    %176 = vector.load %arg1[%c1_61, %c0_62, %c256_63] : memref<2x32x384xf32, #tpu.memory_space<vmem>>, vector<1x32x128xf32>
    %177 = vector.shape_cast %176 : vector<1x32x128xf32> to vector<32x128xf32>
    %c1_64 = arith.constant 1 : index
    %c0_65 = arith.constant 0 : index
    %c0_66 = arith.constant 0 : index
    %178 = vector.load %arg2[%c1_64, %c0_65, %c0_66] : memref<2x128x32xf32, #tpu.memory_space<vmem>>, vector<1x128x32xf32>
    %179 = vector.shape_cast %178 : vector<1x128x32xf32> to vector<128x32xf32>
    %c1_67 = arith.constant 1 : index
    %c0_68 = arith.constant 0 : index
    %c0_69 = arith.constant 0 : index
    %180 = vector.load %arg3[%c1_67, %c0_68, %c0_69] : memref<2x1x512xf32, #tpu.memory_space<vmem>>, vector<1x1x96xf32>
    %181 = vector.shape_cast %180 : vector<1x1x96xf32> to vector<1x96xf32>
    %c1_70 = arith.constant 1 : index
    %c0_71 = arith.constant 0 : index
    %c128_72 = arith.constant 128 : index
    %182 = vector.load %arg3[%c1_70, %c0_71, %c128_72] : memref<2x1x512xf32, #tpu.memory_space<vmem>>, vector<1x1x32xf32>
    %183 = vector.shape_cast %182 : vector<1x1x32xf32> to vector<1x32xf32>
    %c1_73 = arith.constant 1 : index
    %c0_74 = arith.constant 0 : index
    %c256_75 = arith.constant 256 : index
    %184 = vector.load %arg3[%c1_73, %c0_74, %c256_75] : memref<2x1x512xf32, #tpu.memory_space<vmem>>, vector<1x1x128xf32>
    %185 = vector.shape_cast %184 : vector<1x1x128xf32> to vector<1x128xf32>
    %c1_76 = arith.constant 1 : index
    %c0_77 = arith.constant 0 : index
    %c384_78 = arith.constant 384 : index
    %186 = vector.load %arg3[%c1_76, %c0_77, %c384_78] : memref<2x1x512xf32, #tpu.memory_space<vmem>>, vector<1x1x32xf32>
    %187 = vector.shape_cast %186 : vector<1x1x32xf32> to vector<1x32xf32>
    %cst_79 = arith.constant dense<0.000000e+00> : vector<16xf32>
    %188 = vector.multi_reduction <add>, %171, %cst_79 [1] : vector<16x32xf32> to vector<16xf32>
    %189 = vector.shape_cast %188 : vector<16xf32> to vector<16x1xf32>
    %cst_80 = arith.constant 3.200000e+01 : f32
    %190 = vector.broadcast %cst_80 : f32 to vector<16x1xf32>
    %191 = arith.divf %189, %190 : vector<16x1xf32>
    %192 = vector.broadcast %191 : vector<16x1xf32> to vector<16x32xf32>
    %193 = arith.subf %171, %192 : vector<16x32xf32>
    %194 = arith.mulf %193, %193 : vector<16x32xf32>
    %cst_81 = arith.constant dense<0.000000e+00> : vector<16xf32>
    %195 = vector.multi_reduction <add>, %194, %cst_81 [1] : vector<16x32xf32> to vector<16xf32>
    %196 = vector.shape_cast %195 : vector<16xf32> to vector<16x1xf32>
    %cst_82 = arith.constant 3.200000e+01 : f32
    %197 = vector.broadcast %cst_82 : f32 to vector<16x1xf32>
    %198 = arith.divf %196, %197 : vector<16x1xf32>
    %199 = vector.broadcast %191 : vector<16x1xf32> to vector<16x32xf32>
    %200 = arith.subf %171, %199 : vector<16x32xf32>
    %cst_83 = arith.constant 9.99999974E-6 : f32
    %201 = vector.broadcast %cst_83 : f32 to vector<16x1xf32>
    %202 = arith.addf %198, %201 : vector<16x1xf32>
    %203 = math.rsqrt %202 : vector<16x1xf32>
    %204 = vector.broadcast %203 : vector<16x1xf32> to vector<16x32xf32>
    %205 = arith.mulf %200, %204 : vector<16x32xf32>
    %cst_84 = arith.constant dense<0.000000e+00> : vector<16x96xf32>
    %206 = tpu.matmul %205, %173, %cst_84 {dimension_numbers = #tpu.dot_dimension_numbers<[1], [0], [0], [1], [0, 0, 1, 1], [], []>} : vector<16x32xf32>, vector<32x96xf32>, vector<16x96xf32> -> vector<16x96xf32>
    %207 = vector.broadcast %181 : vector<1x96xf32> to vector<16x96xf32>
    %208 = arith.addf %206, %207 : vector<16x96xf32>
    %209 = vector.shape_cast %208 : vector<16x96xf32> to vector<2x8x96xf32>
    %210 = vector.extract_strided_slice %209 {offsets = [0, 0, 0], sizes = [2, 8, 32], strides = [1, 1, 1]} : vector<2x8x96xf32> to vector<2x8x32xf32>
    %211 = vector.extract_strided_slice %209 {offsets = [0, 0, 32], sizes = [2, 8, 32], strides = [1, 1, 1]} : vector<2x8x96xf32> to vector<2x8x32xf32>
    %212 = vector.extract_strided_slice %209 {offsets = [0, 0, 64], sizes = [2, 8, 32], strides = [1, 1, 1]} : vector<2x8x96xf32> to vector<2x8x32xf32>
    %213 = vector.shape_cast %16 : vector<1x32xf32> to vector<1x1x32xf32>
    %214 = vector.broadcast %213 : vector<1x1x32xf32> to vector<2x8x32xf32>
    %215 = arith.mulf %210, %214 : vector<2x8x32xf32>
    %216 = vector.shape_cast %24 : vector<1x32xf32> to vector<1x1x32xf32>
    %217 = vector.broadcast %216 : vector<1x1x32xf32> to vector<2x8x32xf32>
    %218 = arith.mulf %210, %217 : vector<2x8x32xf32>
    %219 = vector.shape_cast %32 : vector<1x32xf32> to vector<1x1x32xf32>
    %220 = vector.broadcast %219 : vector<1x1x32xf32> to vector<2x8x32xf32>
    %221 = arith.mulf %210, %220 : vector<2x8x32xf32>
    %222 = vector.shape_cast %40 : vector<1x32xf32> to vector<1x1x32xf32>
    %223 = vector.broadcast %222 : vector<1x1x32xf32> to vector<2x8x32xf32>
    %224 = arith.mulf %210, %223 : vector<2x8x32xf32>
    %225 = tpu.concatenate %215, %218, %221, %224 in 1 : vector<2x8x32xf32>, vector<2x8x32xf32>, vector<2x8x32xf32>, vector<2x8x32xf32> -> vector<2x32x32xf32>
    "tpu.trace_start"() <{level = 10 : i32, message = "brc,bkc->brk"}> : () -> ()
    %cst_85 = arith.constant dense<0.000000e+00> : vector<2x32x8xf32>
    %226 = tpu.matmul %225, %211, %cst_85 {dimension_numbers = #tpu.dot_dimension_numbers<[2], [2], [1], [1], [0, 0, 0, 1, 1, 1], [0], [0]>} : vector<2x32x32xf32>, vector<2x8x32xf32>, vector<2x32x8xf32> -> vector<2x32x8xf32>
    "tpu.trace_stop"() : () -> ()
    %227 = vector.shape_cast %7 : vector<32x8xf32> to vector<1x32x8xf32>
    %228 = vector.broadcast %227 : vector<1x32x8xf32> to vector<2x32x8xf32>
    %229 = arith.addf %226, %228 : vector<2x32x8xf32>
    %cst_86 = arith.constant dense<0xFF800000> : vector<2x32xf32>
    %230 = vector.multi_reduction <maximumf>, %229, %cst_86 [2] : vector<2x32x8xf32> to vector<2x32xf32>
    %231 = vector.shape_cast %230 : vector<2x32xf32> to vector<2x32x1xf32>
    %232 = vector.broadcast %231 : vector<2x32x1xf32> to vector<2x32x8xf32>
    %233 = arith.subf %229, %232 : vector<2x32x8xf32>
    %234 = math.exp %233 : vector<2x32x8xf32>
    %cst_87 = arith.constant dense<0.000000e+00> : vector<2x32xf32>
    %235 = vector.multi_reduction <add>, %234, %cst_87 [2] : vector<2x32x8xf32> to vector<2x32xf32>
    %236 = vector.shape_cast %235 : vector<2x32xf32> to vector<2x32x1xf32>
    %237 = tpu.reciprocal %236 {approx = true} : vector<2x32x1xf32> -> vector<2x32x1xf32>
    %238 = vector.broadcast %237 : vector<2x32x1xf32> to vector<2x32x8xf32>
    %239 = arith.mulf %234, %238 : vector<2x32x8xf32>
    "tpu.trace_start"() <{level = 10 : i32, message = "brk,bkc->brc"}> : () -> ()
    %cst_88 = arith.constant dense<0.000000e+00> : vector<2x32x32xf32>
    %240 = tpu.matmul %239, %212, %cst_88 {dimension_numbers = #tpu.dot_dimension_numbers<[2], [1], [1], [2], [0, 0, 0, 1, 1, 2], [0], [0]>} : vector<2x32x8xf32>, vector<2x8x32xf32>, vector<2x32x32xf32> -> vector<2x32x32xf32>
    "tpu.trace_stop"() : () -> ()
    %241 = vector.extract_strided_slice %240 {offsets = [0, 0, 0], sizes = [2, 8, 32], strides = [1, 1, 1]} : vector<2x32x32xf32> to vector<2x8x32xf32>
    %242 = vector.shape_cast %16 : vector<1x32xf32> to vector<1x1x32xf32>
    %243 = vector.broadcast %242 : vector<1x1x32xf32> to vector<2x8x32xf32>
    %244 = arith.mulf %243, %241 : vector<2x8x32xf32>
    %245 = vector.extract_strided_slice %240 {offsets = [0, 8, 0], sizes = [2, 8, 32], strides = [1, 1, 1]} : vector<2x32x32xf32> to vector<2x8x32xf32>
    %246 = vector.shape_cast %24 : vector<1x32xf32> to vector<1x1x32xf32>
    %247 = vector.broadcast %246 : vector<1x1x32xf32> to vector<2x8x32xf32>
    %248 = arith.mulf %247, %245 : vector<2x8x32xf32>
    %249 = arith.addf %244, %248 : vector<2x8x32xf32>
    %250 = vector.extract_strided_slice %240 {offsets = [0, 16, 0], sizes = [2, 8, 32], strides = [1, 1, 1]} : vector<2x32x32xf32> to vector<2x8x32xf32>
    %251 = vector.shape_cast %32 : vector<1x32xf32> to vector<1x1x32xf32>
    %252 = vector.broadcast %251 : vector<1x1x32xf32> to vector<2x8x32xf32>
    %253 = arith.mulf %252, %250 : vector<2x8x32xf32>
    %254 = arith.addf %249, %253 : vector<2x8x32xf32>
    %255 = vector.extract_strided_slice %240 {offsets = [0, 24, 0], sizes = [2, 8, 32], strides = [1, 1, 1]} : vector<2x32x32xf32> to vector<2x8x32xf32>
    %256 = vector.shape_cast %40 : vector<1x32xf32> to vector<1x1x32xf32>
    %257 = vector.broadcast %256 : vector<1x1x32xf32> to vector<2x8x32xf32>
    %258 = arith.mulf %257, %255 : vector<2x8x32xf32>
    %259 = arith.addf %254, %258 : vector<2x8x32xf32>
    %260 = vector.shape_cast %259 : vector<2x8x32xf32> to vector<16x32xf32>
    %cst_89 = arith.constant dense<0.000000e+00> : vector<16x32xf32>
    %261 = tpu.matmul %260, %175, %cst_89 {dimension_numbers = #tpu.dot_dimension_numbers<[1], [0], [0], [1], [0, 0, 1, 1], [], []>} : vector<16x32xf32>, vector<32x32xf32>, vector<16x32xf32> -> vector<16x32xf32>
    %262 = arith.addf %171, %261 : vector<16x32xf32>
    %263 = vector.broadcast %183 : vector<1x32xf32> to vector<16x32xf32>
    %264 = arith.addf %262, %263 : vector<16x32xf32>
    %cst_90 = arith.constant dense<0.000000e+00> : vector<16xf32>
    %265 = vector.multi_reduction <add>, %264, %cst_90 [1] : vector<16x32xf32> to vector<16xf32>
    %266 = vector.shape_cast %265 : vector<16xf32> to vector<16x1xf32>
    %cst_91 = arith.constant 3.200000e+01 : f32
    %267 = vector.broadcast %cst_91 : f32 to vector<16x1xf32>
    %268 = arith.divf %266, %267 : vector<16x1xf32>
    %269 = vector.broadcast %268 : vector<16x1xf32> to vector<16x32xf32>
    %270 = arith.subf %264, %269 : vector<16x32xf32>
    %271 = arith.mulf %270, %270 : vector<16x32xf32>
    %cst_92 = arith.constant dense<0.000000e+00> : vector<16xf32>
    %272 = vector.multi_reduction <add>, %271, %cst_92 [1] : vector<16x32xf32> to vector<16xf32>
    %273 = vector.shape_cast %272 : vector<16xf32> to vector<16x1xf32>
    %cst_93 = arith.constant 3.200000e+01 : f32
    %274 = vector.broadcast %cst_93 : f32 to vector<16x1xf32>
    %275 = arith.divf %273, %274 : vector<16x1xf32>
    %276 = vector.broadcast %268 : vector<16x1xf32> to vector<16x32xf32>
    %277 = arith.subf %264, %276 : vector<16x32xf32>
    %cst_94 = arith.constant 9.99999974E-6 : f32
    %278 = vector.broadcast %cst_94 : f32 to vector<16x1xf32>
    %279 = arith.addf %275, %278 : vector<16x1xf32>
    %280 = math.rsqrt %279 : vector<16x1xf32>
    %281 = vector.broadcast %280 : vector<16x1xf32> to vector<16x32xf32>
    %282 = arith.mulf %277, %281 : vector<16x32xf32>
    %cst_95 = arith.constant dense<0.000000e+00> : vector<16x128xf32>
    %283 = tpu.matmul %282, %177, %cst_95 {dimension_numbers = #tpu.dot_dimension_numbers<[1], [0], [0], [1], [0, 0, 1, 1], [], []>} : vector<16x32xf32>, vector<32x128xf32>, vector<16x128xf32> -> vector<16x128xf32>
    %284 = vector.broadcast %185 : vector<1x128xf32> to vector<16x128xf32>
    %285 = arith.addf %283, %284 : vector<16x128xf32>
    %cst_96 = arith.constant 5.000000e-01 : f32
    %286 = vector.broadcast %cst_96 : f32 to vector<16x128xf32>
    %287 = arith.mulf %286, %285 : vector<16x128xf32>
    %cst_97 = arith.constant 4.471500e-02 : f32
    %288 = vector.broadcast %cst_97 : f32 to vector<16x128xf32>
    %289 = arith.mulf %288, %285 : vector<16x128xf32>
    %290 = arith.mulf %289, %285 : vector<16x128xf32>
    %291 = arith.mulf %290, %285 : vector<16x128xf32>
    %292 = arith.addf %285, %291 : vector<16x128xf32>
    %cst_98 = arith.constant 0.797884583 : f32
    %293 = vector.broadcast %cst_98 : f32 to vector<16x128xf32>
    %294 = arith.mulf %293, %292 : vector<16x128xf32>
    %295 = math.tanh %294 : vector<16x128xf32>
    %cst_99 = arith.constant 1.000000e+00 : f32
    %296 = vector.broadcast %cst_99 : f32 to vector<16x128xf32>
    %297 = arith.addf %296, %295 : vector<16x128xf32>
    %298 = arith.mulf %287, %297 : vector<16x128xf32>
    %cst_100 = arith.constant dense<0.000000e+00> : vector<16x32xf32>
    %299 = tpu.matmul %298, %179, %cst_100 {dimension_numbers = #tpu.dot_dimension_numbers<[1], [0], [0], [1], [0, 0, 1, 1], [], []>} : vector<16x128xf32>, vector<128x32xf32>, vector<16x32xf32> -> vector<16x32xf32>
    %300 = vector.broadcast %187 : vector<1x32xf32> to vector<16x32xf32>
    %301 = arith.addf %299, %300 : vector<16x32xf32>
    %302 = arith.addf %264, %301 : vector<16x32xf32>
    %c0_101 = arith.constant 0 : index
    %c0_102 = arith.constant 0 : index
    %303 = vector.load %arg4[%c0_101, %c0_102] : memref<16x32xf32, #tpu.memory_space<vmem>>, vector<16x32xf32>
    tpu.vector_store %arg4[%c0_101, %c0_102], %302 {strides = array<i32>} : memref<16x32xf32, #tpu.memory_space<vmem>>, vector<16x32xf32>,
    return
  }
}

</mosaic_0001>

<bundles_post_ra>
// kernel: secondary_node_forward.1
= control target key start
LH: loop header
LB: loop body
LE: loop exit
PB: predicated region body
PF: predicated region fallthrough
CT: control target
= control target key end

     0   :  { %vm74_vm0 = vcmask 261120   ;;  %s3108_s0 = inlined_call_operand.vmem [shape: f32[16,32], index: 0, kind: input, shape index: {}]   ;;  %s3109_s1 = inlined_call_operand.vmem [shape: f32[2,32,384], index: 1, kind: input, shape index: {}]   ;;  %s3110_s2 = inlined_call_operand.vmem [shape: f32[2,128,32], index: 2, kind: input, shape index: {}]   ;;  %s3111_s3 = inlined_call_operand.vmem [shape: f32[2,1,512], index: 3, kind: input, shape index: {}]   ;;  %s3112_s4 = inlined_call_operand.hbm [shape: f32[16,32], index: 4, kind: output, shape index: {}]  }
   0x1   :  { %v2660_v0 = vld [vmem:[%s3108_s0] sm:$0xff]  ;;  %v2665_v1 = vld [vmem:[%s3108_s0 + $0x8] sm:$0xff] }
   0x2   :  { %9 = vsyncpa [#allocation3], 0  ;;  %v75_v2 = vsel %vm74_vm0, %v2660_v0, 0.0  ;;  %v78_v3 = vsel %vm74_vm0, %v2665_v1, 0.0  ;;  %v42_v14 = vld [vmem:[%s3109_s1] sm:$0xff]  ;;  %v43_v15 = vld [vmem:[%s3109_s1 + $0x18] sm:$0xff]  ;;  %v20_v30 = vlaneseq }
   0x3   :  { %76 = vadd.xlane.f32.xlu0 %v75_v2  ;;  %v44_v16 = vld [vmem:[%s3109_s1 + $0x30] sm:$0xff]  ;;  %v2394_v17 = vpack.c.bf16 %v43_v15, %v42_v14  ;;  %v45_v18 = vld [vmem:[%s3109_s1 + $0x48] sm:$0xff]  ;;  %v2625_v32 = vmov 0.0   ;;  %v1994_v37 = vld [vmem:[%s3111_s3] ss:$0 sm:$0xff]  ;;  %s2626_s28 = smov 96  }
   0x4   :  { %v2398_v19 = vpack.c.bf16 %v45_v18, %v44_v16  ;;  %v23_v31 = vand.u32 127, %v20_v30  ;;  %v21_v35 = vshrl.u32 %v20_v30, 7  ;;  %v2627_v53 = vmov -1e+30   ;;  %s2628_s29 = smov 64   ;;  %s2629_s15 = smov [#allocation2]  }
   0x5   :  { %2395 = vmatprep.subr.bf16.mxu1 %v2394_v17  ;;  %vm401_vm12 = vcmask 64512   ;;  %s1983_s16 = sshll.u32 %s2629_s15, 4  ;;  %s1984_s16 = int_to_ptr.vmem [resolvable:$true] %s1983_s16 }
   0x6   :  { %2397 = vmatpush3.bf16.msra.mxu1 %v2394_v17  ;;  %vm30_vm1 = vcmp.ge.s32.totalorder %v23_v31, 8  ;;  %vm31_vm2 = vcmp.lt.s32.totalorder %v23_v31, 16  ;;  %vm34_vm3 = vcmp.ge.s32.totalorder %v23_v31, 16  ;;  %vm35_vm4 = vcmp.lt.s32.totalorder %v23_v31, 24  ;;  %s2601_s17 = scalar_lea.vmem %s1984_s16, 256  ;;  %p2606_p1 = scmp.lt.s32.totalorder %s1984_s16, %s1984_s16 }
   0x7   :  { %79 = vadd.xlane.f32.xlu0 %v78_v3  ;;  %2399 = vmatprep.subr.bf16.mxu1 %v2398_v19  ;;  %vm32_vm5 = vmand %vm30_vm1, %vm31_vm2  ;;  %vm38_vm6 = vcmp.ge.s32.totalorder %v23_v31, 24  ;;  %vm39_vm7 = vcmp.lt.s32.totalorder %v23_v31, 32  ;;  %vm24_vm10 = vcmp.ge.s32.totalorder %v21_v35, %v23_v31  ;;  %vm27_vm11 = vcmp.lt.s32.totalorder %v23_v31, 8  ;;  %p2602_p0 = scmp.ne.s32.totalorder %s1984_s16, %s2601_s17  ;;  %p2607_p2 = scmp.lt.s32.totalorder %s2601_s17, %s2601_s17 }
   0x8   :  { %v2689_v33 = vsel %vm32_vm5, 1.0, %v2625_v32  ;;  %vm36_vm8 = vmand %vm34_vm3, %vm35_vm4  ;;  %v2700_v41 = vsel %vm27_vm11, 1.0, %v2625_v32  ;;  %v2737_v54 = vsel %vm24_vm10, 0.0, %v2627_v53 }
   0x9   :  { %v2691_v34 = vsel %vm36_vm8, 1.0, %v2625_v32  ;;  %vm40_vm9 = vmand %vm38_vm6, %vm39_vm7  ;;  %p2608_p3 = por %p2607_p2, %p2606_p1 }
   0xa   :  { %2401 = vmatpush3.bf16.msra.mxu1 %v2398_v19  ;;  %v2693_v36 = vsel %vm40_vm9, 1.0, %v2625_v32 }
   0xb   :  { %p2609_p4 = pnand %p2608_p3, %p2602_p0 }
  0x90   :  { %v77_v4 = vpop.xlane.xlu0 %76 }
  0x91   :  { %v82_v5 = vmul.f32 0.03125, %v77_v4 }
  0x93   :  { %v84_v6 = vsub.f32 %v2660_v0, %v82_v5 }
  0x94   :  { %v80_v7 = vpop.xlane.xlu0 %79 }
  0x95   :  { %v83_v8 = vmul.f32 0.03125, %v80_v7  ;;  %v86_v9 = vmul.f32 %v84_v6, %v84_v6 }
  0x97   :  { %v85_v10 = vsub.f32 %v2665_v1, %v83_v8  ;;  %v88_v11 = vsel %vm74_vm0, %v86_v9, 0.0 }
  0x98   :  { %89 = vadd.xlane.f32.xlu1 %v88_v11 }
  0x99   :  { %v87_v12 = vmul.f32 %v85_v10, %v85_v10 }
  0x9b   :  { %v91_v13 = vsel %vm74_vm0, %v87_v12, 0.0 }
  0x9c   :  { %92 = vadd.xlane.f32.xlu1 %v91_v13 }
 0x125   :  { %v90_v20 = vpop.xlane.xlu1 %89 }
 0x126   :  { %v94_v21 = vmul.f32 0.03125, %v90_v20 }
 0x128   :  { %v96_v22 = vadd.f32 1e-05, %v94_v21 }
 0x129   :  { %v93_v23 = vpop.xlane.xlu1 %92 }
 0x12a   :  { %2513 = vrsqrt.f32 %v96_v22  ;;  %v95_v24 = vmul.f32 0.03125, %v93_v23 }
 0x12c   :  { %v97_v25 = vadd.f32 1e-05, %v95_v24 }
 0x12e   :  { %2515 = vrsqrt.f32 %v97_v25 }
 0x134   :  { %v2514_v26 = vpop.eup %2513 }
 0x135   :  { %v100_v27 = vmul.f32 %v2514_v26, %v84_v6 }
 0x137   :  { %2202 = vmatprep.mubr.msk.f32.mxu1 %vm74_vm0, %v100_v27 }
 0x138   :  { %v2516_v28 = vpop.eup %2515 }
 0x139   :  { %v101_v29 = vmul.f32 %v2516_v28, %v85_v10 }
 0x13b   :  { %2203 = vmatmul.mubr.msk.f32.vlgmr.msra.gmra.mrb[0].mxu1 %vm74_vm0, %v101_v29 }
 0x20e   :  { %v2204_v38 = vpop.f32.mrb[0].mxu1 }
 0x20f   :  { %v2698_v39 = vadd.f32 %v2204_v38, %v1994_v37  ;;  %v180_v40 = vpop.f32.mrb[1].mxu1 }
 0x210   :  { %v2702_v42 = vadd.f32 %v1994_v37, %v180_v40 }
 0x211   :  { %300 = vrot.lane.b32.xlu1 %v2698_v39, %s2626_s28  ;;  %v190_v49 = vmul.f32 %v2698_v39, %v2700_v41  ;;  %v192_v50 = vmul.f32 %v2698_v39, %v2689_v33  ;;  %v194_v51 = vmul.f32 %v2698_v39, %v2691_v34  ;;  %v196_v52 = vmul.f32 %v2698_v39, %v2693_v36 }
 0x212   :  { %198 = vrot.lane.b32.xlu0 %v2702_v42, %s2626_s28  ;;  %v189_v43 = vmul.f32 %v2702_v42, %v2700_v41  ;;  %v191_v46 = vmul.f32 %v2702_v42, %v2689_v33  ;;  %v193_v47 = vmul.f32 %v2702_v42, %v2691_v34  ;;  %v195_v48 = vmul.f32 %v2702_v42, %v2693_v36 }
 0x214   :  { %2207 = vmatprep.mubr.msk.f32.mxu1 %vm74_vm0, %v189_v43 }
 0x283   :  { %v301_v45 = vpop.permute.xlu1 %300 }
 0x284   :  { %v199_v44 = vpop.permute.xlu0 %198 }
 0x285   :  { %2205 = vmatprep.subr.msk.mxu1 %vm74_vm0, %v199_v44 }
 0x286   :  { %2206 = vmatpush3.xpose.msk.msra.mxu1 %vm74_vm0, %v199_v44 }
 0x287   :  { %2213 = vmatprep.subr.msk.mxu1 %vm74_vm0, %v301_v45 }
 0x289   :  { %2208 = vmatmul.mubr.msk.f32.vlgmr.msra.gmra.mrb[2].mxu1 %vm74_vm0, %v191_v46 }
 0x28a   :  { %2210 = vmatprep.mubr.msk.f32.mxu1 %vm74_vm0, %v193_v47  ;;  %2214 = vmatpush3.xpose.msk.msra.mxu1 %vm74_vm0, %v301_v45 }
 0x28d   :  { %2211 = vmatmul.mubr.msk.f32.gmra.mrb[4].mxu1 %vm74_vm0, %v195_v48 }
 0x28e   :  { %2215 = vmatprep.mubr.msk.f32.mxu1 %vm74_vm0, %v190_v49 }
 0x291   :  { %2216 = vmatmul.mubr.msk.f32.vlgmr.msra.gmra.mrb[6].mxu1 %vm74_vm0, %v192_v50 }
 0x292   :  { %2218 = vmatprep.mubr.msk.f32.mxu1 %vm74_vm0, %v194_v51 }
 0x295   :  { %2219 = vmatmul.mubr.msk.f32.gmra.mrb[8].mxu1 %vm74_vm0, %v196_v52 }
 0x35c   :  { %v2209_v55 = vpop.f32.mrb[2].mxu1 }
 0x35d   :  { %v286_v56 = vadd.f32 %v2209_v55, %v2737_v54  ;;  %v280_v57 = vpop.f32.mrb[3].mxu1 }
 0x35e   :  { %v281_v58 = vadd.f32 %v280_v57, %v2737_v54 }
 0x35f   :  { %v405_v59 = vsel %vm401_vm12, %v286_v56, -inf }
 0x360   :  { %406 = vmax.xlane.f32.xlu0 %v405_v59  ;;  %v2212_v60 = vpop.f32.mrb[4].mxu1  ;;  %v402_v61 = vsel %vm401_vm12, %v281_v58, -inf }
 0x361   :  { %v296_v62 = vadd.f32 %v2212_v60, %v2737_v54  ;;  %v290_v63 = vpop.f32.mrb[5].mxu1  ;;  %403 = vmax.xlane.f32.xlu1 %v402_v61 }
 0x362   :  { %v291_v2 = vadd.f32 %v290_v63, %v2737_v54 }
 0x363   :  { %v411_v3 = vsel %vm401_vm12, %v296_v62, -inf }
 0x364   :  { %v2217_v4 = vpop.f32.mrb[6].mxu1  ;;  %v408_v5 = vsel %vm401_vm12, %v291_v2, -inf }
 0x365   :  { %v388_v6 = vadd.f32 %v2217_v4, %v2737_v54  ;;  %v382_v7 = vpop.f32.mrb[7].mxu1  ;;  %409 = vmax.xlane.f32.xlu0 %v408_v5  ;;  %412 = vmax.xlane.f32.xlu1 %v411_v3 }
 0x366   :  { %v383_v8 = vadd.f32 %v382_v7, %v2737_v54 }
 0x367   :  { %v417_v9 = vsel %vm401_vm12, %v388_v6, -inf }
 0x368   :  { %v2220_v10 = vpop.f32.mrb[8].mxu1  ;;  %v414_v11 = vsel %vm401_vm12, %v383_v8, -inf }
 0x369   :  { %v398_v12 = vadd.f32 %v2220_v10, %v2737_v54  ;;  %v392_v13 = vpop.f32.mrb[9].mxu1  ;;  %415 = vmax.xlane.f32.xlu0 %v414_v11  ;;  %418 = vmax.xlane.f32.xlu1 %v417_v9 }
 0x36a   :  { %v393_v14 = vadd.f32 %v392_v13, %v2737_v54 }
 0x36b   :  { %v423_v15 = vsel %vm401_vm12, %v398_v12, -inf }
 0x36c   :  { %v420_v16 = vsel %vm401_vm12, %v393_v14, -inf }
 0x36d   :  { %421 = vmax.xlane.f32.xlu0 %v420_v16  ;;  %424 = vmax.xlane.f32.xlu1 %v423_v15 }
 0x3ed   :  { %v407_v17 = vpop.xlane.xlu0 %406 }
 0x3ee   :  { %v427_v18 = vsub.f32 %v286_v56, %v407_v17  ;;  %v404_v19 = vpop.xlane.xlu1 %403 }
 0x3ef   :  { %v426_v20 = vsub.f32 %v281_v58, %v404_v19 }
 0x3f0   :  { %v436_v21 = vmul.f32 1.442695, %v427_v18 }
 0x3f1   :  { %v434_v22 = vmul.f32 1.442695, %v426_v20 }
 0x3f2   :  { %2517 = vpow2.f32 %v436_v21  ;;  %v410_v23 = vpop.xlane.xlu0 %409  ;;  %v413_v24 = vpop.xlane.xlu1 %412 }
 0x3f3   :  { %2519 = vpow2.f32 %v434_v22  ;;  %v428_v25 = vsub.f32 %v291_v2, %v410_v23  ;;  %v429_v26 = vsub.f32 %v296_v62, %v413_v24 }
 0x3f5   :  { %v438_v27 = vmul.f32 1.442695, %v428_v25  ;;  %v440_v28 = vmul.f32 1.442695, %v429_v26  ;;  %v46_v26 = vld [vmem:[%s3109_s1 + $0x8] sm:$0xff] }
 0x3f6   :  { %v416_v29 = vpop.xlane.xlu0 %415  ;;  %v419_v30 = vpop.xlane.xlu1 %418 }
 0x3f7   :  { %2521 = vpow2.f32 %v438_v27  ;;  %v430_v31 = vsub.f32 %v383_v8, %v416_v29  ;;  %v431_v32 = vsub.f32 %v388_v6, %v419_v30  ;;  %v47_v27 = vld [vmem:[%s3109_s1 + $0x20] sm:$0xff]  ;;  %v48_v29 = vld [vmem:[%s3109_s1 + $0x38] sm:$0xff]  ;;  %v49_v30 = vld [vmem:[%s3109_s1 + $0x50] sm:$0xff] }
 0x3f8   :  { %2523 = vpow2.f32 %v440_v28  ;;  %v2402_v28 = vpack.c.bf16 %v47_v27, %v46_v26 }
 0x3f9   :  { %v442_v35 = vmul.f32 1.442695, %v430_v31  ;;  %v444_v37 = vmul.f32 1.442695, %v431_v32  ;;  %v2406_v31 = vpack.c.bf16 %v49_v30, %v48_v29 }
 0x3fa   :  { %v422_v38 = vpop.xlane.xlu0 %421  ;;  %v425_v40 = vpop.xlane.xlu1 %424 }
 0x3fb   :  { %2525 = vpow2.f32 %v442_v35  ;;  %v432_v43 = vsub.f32 %v393_v14, %v422_v38  ;;  %v433_v44 = vsub.f32 %v398_v12, %v425_v40 }
 0x3fc   :  { %v2518_v45 = vpop.eup %2517  ;;  %2527 = vpow2.f32 %v444_v37 }
 0x3fd   :  { %v2520_v46 = vpop.eup %2519  ;;  %v446_v47 = vmul.f32 1.442695, %v432_v43  ;;  %v448_v48 = vmul.f32 1.442695, %v433_v44  ;;  %v453_v49 = vsel %vm401_vm12, %v2518_v45, 0.0 }
 0x3fe   :  { %454 = vadd.xlane.f32.xlu1 %v453_v49  ;;  %v450_v50 = vsel %vm401_vm12, %v2520_v46, 0.0 }
 0x3ff   :  { %2529 = vpow2.f32 %v446_v47  ;;  %451 = vadd.xlane.f32.xlu0 %v450_v50 }
 0x400   :  { %2531 = vpow2.f32 %v448_v48 }
 0x401   :  { %v2522_v51 = vpop.eup %2521 }
 0x402   :  { %v2524_v52 = vpop.eup %2523  ;;  %v456_v53 = vsel %vm401_vm12, %v2522_v51, 0.0 }
 0x403   :  { %457 = vadd.xlane.f32.xlu0 %v456_v53  ;;  %v459_v55 = vsel %vm401_vm12, %v2524_v52, 0.0 }
 0x404   :  { %460 = vadd.xlane.f32.xlu1 %v459_v55 }
 0x405   :  { %v2526_v56 = vpop.eup %2525 }
 0x406   :  { %v2528_v57 = vpop.eup %2527  ;;  %v462_v58 = vsel %vm401_vm12, %v2526_v56, 0.0 }
 0x407   :  { %463 = vadd.xlane.f32.xlu0 %v462_v58  ;;  %v465_v59 = vsel %vm401_vm12, %v2528_v57, 0.0 }
 0x408   :  { %466 = vadd.xlane.f32.xlu1 %v465_v59 }
 0x409   :  { %v2530_v60 = vpop.eup %2529 }
 0x40a   :  { %v2532_v61 = vpop.eup %2531  ;;  %v468_v62 = vsel %vm401_vm12, %v2530_v60, 0.0 }
 0x40b   :  { %469 = vadd.xlane.f32.xlu0 %v468_v62  ;;  %v471_v63 = vsel %vm401_vm12, %v2532_v61, 0.0 }
 0x40c   :  { %472 = vadd.xlane.f32.xlu1 %v471_v63 }
 0x41d   :  { %590 = vrot.lane.b32.xlu1 %v2698_v39, %s2628_s29 }
 0x421   :  { %490 = vrot.lane.b32.xlu0 %v2702_v42, %s2628_s29 }
 0x48b   :  { %v455_v2 = vpop.xlane.xlu1 %454 }
 0x48c   :  { %v452_v3 = vpop.xlane.xlu0 %451 }
 0x48d   :  { %2533 = vrcp.f32 %v452_v3 }
 0x48e   :  { %2535 = vrcp.f32 %v455_v2 }
 0x490   :  { %v458_v4 = vpop.xlane.xlu0 %457 }
 0x491   :  { %2537 = vrcp.f32 %v458_v4  ;;  %v461_v5 = vpop.xlane.xlu1 %460 }
 0x492   :  { %2539 = vrcp.f32 %v461_v5 }
 0x494   :  { %v464_v6 = vpop.xlane.xlu0 %463 }
 0x495   :  { %2541 = vrcp.f32 %v464_v6  ;;  %v467_v7 = vpop.xlane.xlu1 %466 }
 0x496   :  { %2543 = vrcp.f32 %v467_v7 }
 0x497   :  { %v2534_v8 = vpop.eup %2533 }
 0x498   :  { %v470_v9 = vpop.xlane.xlu0 %469  ;;  %v482_v10 = vmul.f32 %v2534_v8, %v2520_v46  ;;  %v2536_v11 = vpop.eup %2535 }
 0x499   :  { %2545 = vrcp.f32 %v470_v9  ;;  %v473_v39 = vpop.xlane.xlu1 %472  ;;  %v483_v13 = vmul.f32 %v2536_v11, %v2518_v45 }
 0x49a   :  { %2547 = vrcp.f32 %v473_v39  ;;  %2223 = vmatprep.mubr.msk.f32.mxu1 %vm401_vm12, %v482_v10 }
 0x49b   :  { %v2538_v42 = vpop.eup %2537 }
 0x49c   :  { %v491_v12 = vpop.permute.xlu0 %490  ;;  %v2540_v15 = vpop.eup %2539  ;;  %v484_v16 = vmul.f32 %v2538_v42, %v2522_v51 }
 0x49d   :  { %v591_v14 = vpop.permute.xlu1 %590  ;;  %2221 = vmatprep.subr.mxu1 %v491_v12  ;;  %v485_v20 = vmul.f32 %v2540_v15, %v2524_v52  ;;  %v51_v15 = vld [vmem:[%s3109_s1 + $0x28] sm:$0xff] }
 0x49e   :  { %2229 = vmatprep.subr.mxu0 %v591_v14  ;;  %2222 = vmatpush3.msra.mxu1 %v491_v12 }
 0x49f   :  { %v2542_v17 = vpop.eup %2541  ;;  %2230 = vmatpush3.msra.mxu0 %v591_v14  ;;  %2224 = vmatmul.mubr.msk.f32.vlgmr.msra.gmra.mrb[10].mxu1 %vm401_vm12, %v483_v13  ;;  %v50_v14 = vld [vmem:[%s3109_s1 + $0x10] sm:$0xff] }
 0x4a0   :  { %v2544_v18 = vpop.eup %2543  ;;  %2226 = vmatprep.mubr.msk.f32.mxu1 %vm401_vm12, %v484_v16  ;;  %v486_v19 = vmul.f32 %v2542_v17, %v2526_v56  ;;  %2403 = vmatprep.subr.bf16.mxu1 %v2402_v28  ;;  %v2410_v16 = vpack.c.bf16 %v51_v15, %v50_v14  ;;  %v52_v17 = vld [vmem:[%s3109_s1 + $0x40] sm:$0xff] }
 0x4a1   :  { %v487_v21 = vmul.f32 %v2544_v18, %v2528_v57  ;;  %2405 = vmatpush3.bf16.msra.mxu1 %v2402_v28  ;;  %v53_v18 = vld [vmem:[%s3109_s1 + $0x58] sm:$0xff] }
 0x4a2   :  { %2231 = vmatprep.mubr.msk.f32.mxu0 %vm401_vm12, %v486_v19  ;;  %2407 = vmatprep.subr.bf16.mxu1 %v2406_v31  ;;  %v2414_v19 = vpack.c.bf16 %v53_v18, %v52_v17 }
 0x4a3   :  { %v2546_v22 = vpop.eup %2545  ;;  %2227 = vmatmul.mubr.msk.f32.gmra.mrb[12].mxu1 %vm401_vm12, %v485_v20  ;;  %2232 = vmatmul.mubr.msk.f32.vlgmr.msra.gmra.mrb[0].mxu0 %vm401_vm12, %v487_v21  ;;  %v54_v20 = vld [vmem:[%s3110_s2] sm:$0xff]  ;;  %v55_v21 = vld [vmem:[%s3110_s2 + $0x8] sm:$0xff] }
 0x4a4   :  { %v2548_v23 = vpop.eup %2547  ;;  %v488_v24 = vmul.f32 %v2546_v22, %v2530_v60  ;;  %2411 = vmatprep.subr.bf16.mxu0 %v2410_v16  ;;  %v2418_v22 = vpack.c.bf16 %v55_v21, %v54_v20  ;;  %v2021_v20 = vld [vmem:[%s3111_s3 + $0x3] ss:$0 sm:$0xff] }
 0x4a5   :  { %v489_v25 = vmul.f32 %v2548_v23, %v2532_v61  ;;  %2409 = vmatpush3.bf16.msra.mxu1 %v2406_v31  ;;  %v2017_v61 = vld [vmem:[%s3111_s3 + $0x1] ss:$0 sm:$0xff]  ;;  %2413 = vmatpush3.bf16.msra.mxu0 %v2410_v16 }
 0x4a6   :  { %2234 = vmatprep.mubr.msk.f32.mxu0 %vm401_vm12, %v488_v24  ;;  %2415 = vmatprep.subr.bf16.mxu0 %v2414_v19 }
 0x4a7   :  { %2235 = vmatmul.mubr.msk.f32.gmra.mrb[2].mxu0 %vm401_vm12, %v489_v25  ;;  %2419 = vmatprep.subr.bf16.mxu1 %v2418_v22 }
 0x4a9   :  { %2417 = vmatpush3.bf16.msra.mxu0 %v2414_v19 }
 0x572   :  { %v2225_v32 = vpop.f32.mrb[10].mxu1 }
 0x573   :  { %v692_v35 = vmul.f32 %v2225_v32, %v2689_v33  ;;  %v571_v37 = vpop.f32.mrb[11].mxu1 }
 0x574   :  { %v690_v38 = vmul.f32 %v571_v37, %v2700_v41  ;;  %v57_v37 = vld [vmem:[%s3110_s2 + $0x18] sm:$0xff] }
 0x576   :  { %v694_v40 = vadd.f32 %v692_v35, %v690_v38  ;;  %v2228_v43 = vpop.f32.mrb[12].mxu1  ;;  %v2233_v44 = vpop.f32.mrb[0].mxu0  ;;  %v56_v35 = vld [vmem:[%s3110_s2 + $0x10] sm:$0xff] }
 0x577   :  { %v693_v45 = vmul.f32 %v2233_v44, %v2689_v33  ;;  %v581_v46 = vpop.f32.mrb[13].mxu1  ;;  %v671_v47 = vpop.f32.mrb[1].mxu0  ;;  %v700_v50 = vmul.f32 %v2228_v43, %v2693_v36  ;;  %v2422_v38 = vpack.c.bf16 %v57_v37, %v56_v35  ;;  %v59_v43 = vld [vmem:[%s3110_s2 + $0x28] sm:$0xff] }
 0x578   :  { %v696_v48 = vmul.f32 %v581_v46, %v2691_v34  ;;  %v691_v49 = vmul.f32 %v671_v47, %v2700_v41  ;;  %v61_v46 = vld [vmem:[%s3110_s2 + $0x38] sm:$0xff] }
 0x57a   :  { %v698_v51 = vadd.f32 %v696_v48, %v694_v40  ;;  %v695_v52 = vadd.f32 %v693_v45, %v691_v49  ;;  %v2236_v53 = vpop.f32.mrb[2].mxu0  ;;  %v58_v40 = vld [vmem:[%s3110_s2 + $0x20] sm:$0xff]  ;;  %v60_v45 = vld [vmem:[%s3110_s2 + $0x30] sm:$0xff]  ;;  %v63_v49 = vld [vmem:[%s3110_s2 + $0x48] sm:$0xff] }
 0x57b   :  { %v681_v55 = vpop.f32.mrb[3].mxu0  ;;  %v701_v58 = vmul.f32 %v2236_v53, %v2693_v36  ;;  %v2426_v44 = vpack.c.bf16 %v59_v43, %v58_v40  ;;  %v2430_v47 = vpack.c.bf16 %v61_v46, %v60_v45  ;;  %v62_v48 = vld [vmem:[%s3110_s2 + $0x40] sm:$0xff]  ;;  %v2024_v45 = vld [vmem:[%s3109_s1 + $0x90] sm:$0xff] }
 0x57c   :  { %v702_v56 = vadd.f32 %v700_v50, %v698_v51  ;;  %v697_v57 = vmul.f32 %v681_v55, %v2691_v34  ;;  %v2434_v50 = vpack.c.bf16 %v63_v49, %v62_v48  ;;  %v64_v51 = vld [vmem:[%s3110_s2 + $0x50] sm:$0xff]  ;;  %v66_v55 = vld [vmem:[%s3110_s2 + $0x60] sm:$0xff] }
 0x57d   :  { %v2022_v43 = vld [vmem:[%s3109_s1 + $0x60] sm:$0xff] }
 0x57e   :  { %v699_v59 = vadd.f32 %v697_v57, %v695_v52  ;;  %2245 = vmatprep.mubr.msk.f32.mxu1 %vm74_vm0, %v702_v56  ;;  %v65_v52 = vld [vmem:[%s3110_s2 + $0x58] sm:$0xff]  ;;  %v67_v56 = vld [vmem:[%s3110_s2 + $0x68] sm:$0xff] }
 0x57f   :  { %v2438_v53 = vpack.c.bf16 %v65_v52, %v64_v51  ;;  %v2442_v57 = vpack.c.bf16 %v67_v56, %v66_v55 }
 0x580   :  { %v703_v60 = vadd.f32 %v701_v58, %v699_v59  ;;  %v68_v58 = vld [vmem:[%s3110_s2 + $0x70] sm:$0xff]  ;;  %v69_v59 = vld [vmem:[%s3110_s2 + $0x78] sm:$0xff] }
 0x582   :  { %2246 = vmatmul.mubr.msk.f32.vlgmr.msra.gmra.mrb[14].mxu1 %vm74_vm0, %v703_v60  ;;  %v2446_v60 = vpack.c.bf16 %v69_v59, %v68_v58 }
 0x583   :  { %2421 = vmatpush3.bf16.msra.mxu1 %v2418_v22 }
 0x584   :  { %2423 = vmatprep.subr.bf16.mxu1 %v2422_v38 }
 0x587   :  { %2425 = vmatpush3.bf16.msra.mxu1 %v2422_v38 }
 0x588   :  { %2427 = vmatprep.subr.bf16.mxu1 %v2426_v44 }
 0x58b   :  { %2429 = vmatpush3.bf16.msra.mxu1 %v2426_v44  ;;  %v2023_v44 = vld [vmem:[%s3109_s1 + $0x78] sm:$0xff] }
 0x58c   :  { %2431 = vmatprep.subr.bf16.mxu1 %v2430_v47  ;;  %v2450_v46 = vpack.c.bf16 %v2023_v44, %v2022_v43 }
 0x58e   :  { %2451 = vmatprep.subr.bf16.mxu0 %v2450_v46 }
 0x58f   :  { %2433 = vmatpush3.bf16.msra.mxu1 %v2430_v47  ;;  %v2025_v47 = vld [vmem:[%s3109_s1 + $0xa8] sm:$0xff] }
 0x590   :  { %2435 = vmatprep.subr.bf16.mxu1 %v2434_v50  ;;  %v2454_v48 = vpack.c.bf16 %v2025_v47, %v2024_v45 }
 0x593   :  { %2437 = vmatpush3.bf16.msra.mxu1 %v2434_v50 }
 0x594   :  { %2439 = vmatprep.subr.bf16.mxu1 %v2438_v53 }
 0x597   :  { %2441 = vmatpush3.bf16.msra.mxu1 %v2438_v53 }
 0x598   :  { %2443 = vmatprep.subr.bf16.mxu1 %v2442_v57 }
 0x59b   :  { %2445 = vmatpush3.bf16.msra.mxu1 %v2442_v57 }
 0x59c   :  { %2447 = vmatprep.subr.bf16.mxu1 %v2446_v60 }
 0x59f   :  { %2449 = vmatpush3.bf16.msra.mxu1 %v2446_v60  ;;  %v2054_v60 = vld [vmem:[%s3111_s3 + $0x4] ss:$0 sm:$0xff] }
 0x655   :  { %v2247_v62 = vpop.f32.mrb[14].mxu1 }
 0x656   :  { %v786_v63 = vadd.f32 %v2247_v62, %v2665_v1  ;;  %v776_v2 = vpop.f32.mrb[15].mxu1 }
 0x657   :  { %v785_v3 = vadd.f32 %v776_v2, %v2660_v0 }
 0x658   :  { %v2802_v4 = vadd.f32 %v2017_v61, %v786_v63 }
 0x659   :  { %v2804_v5 = vadd.f32 %v2017_v61, %v785_v3  ;;  %v2018_v61 = vld [vmem:[%s3111_s3 + $0x2] ss:$0 sm:$0xff] }
 0x65a   :  { %v798_v6 = vsel %vm74_vm0, %v2802_v4, 0.0 }
 0x65b   :  { %799 = vadd.xlane.f32.xlu0 %v798_v6  ;;  %v795_v7 = vsel %vm74_vm0, %v2804_v5, 0.0 }
 0x65c   :  { %796 = vadd.xlane.f32.xlu1 %v795_v7 }
 0x6e8   :  { %v800_v8 = vpop.xlane.xlu0 %799 }
 0x6e9   :  { %v802_v9 = vmul.f32 0.03125, %v800_v8  ;;  %v797_v10 = vpop.xlane.xlu1 %796 }
 0x6ea   :  { %v801_v39 = vmul.f32 0.03125, %v797_v10 }
 0x6eb   :  { %v804_v1 = vsub.f32 %v2802_v4, %v802_v9 }
 0x6ec   :  { %v803_v0 = vsub.f32 %v2804_v5, %v801_v39 }
 0x6ed   :  { %v806_v11 = vmul.f32 %v804_v1, %v804_v1 }
 0x6ee   :  { %v805_v42 = vmul.f32 %v803_v0, %v803_v0 }
 0x6ef   :  { %v810_v12 = vsel %vm74_vm0, %v806_v11, 0.0 }
 0x6f0   :  { %811 = vadd.xlane.f32.xlu1 %v810_v12  ;;  %v807_v13 = vsel %vm74_vm0, %v805_v42, 0.0 }
 0x6f1   :  { %808 = vadd.xlane.f32.xlu0 %v807_v13 }
 0x77d   :  { %v812_v23 = vpop.xlane.xlu1 %811 }
 0x77e   :  { %v814_v24 = vmul.f32 0.03125, %v812_v23  ;;  %v809_v25 = vpop.xlane.xlu0 %808 }
 0x77f   :  { %v813_v26 = vmul.f32 0.03125, %v809_v25 }
 0x780   :  { %v816_v27 = vadd.f32 1e-05, %v814_v24 }
 0x781   :  { %v815_v28 = vadd.f32 1e-05, %v813_v26 }
 0x782   :  { %2549 = vrsqrt.f32 %v816_v27 }
 0x783   :  { %2551 = vrsqrt.f32 %v815_v28 }
 0x78c   :  { %v2550_v29 = vpop.eup %2549 }
 0x78d   :  { %v2552_v30 = vpop.eup %2551  ;;  %v820_v32 = vmul.f32 %v2550_v29, %v804_v1 }
 0x78e   :  { %v819_v31 = vmul.f32 %v2552_v30, %v803_v0 }
 0x790   :  { %2256 = vmatprep.mubr.msk.f32.mxu0 %vm74_vm0, %v819_v31 }
 0x791   :  { %2257 = vmatmul.mubr.msk.f32.vlgmr.msra.gmra.mrb[4].mxu0 %vm74_vm0, %v820_v32 }
 0x792   :  { %2453 = vmatpush3.bf16.msra.mxu0 %v2450_v46 }
 0x793   :  { %2455 = vmatprep.subr.bf16.mxu0 %v2454_v48 }
 0x796   :  { %2457 = vmatpush3.bf16.msra.mxu0 %v2454_v48 }
 0x864   :  { %v2258_v62 = vpop.f32.mrb[4].mxu0 }
 0x865   :  { %v905_v63 = vadd.f32 %v2258_v62, %v2018_v61  ;;  %v899_v2 = vpop.f32.mrb[5].mxu0 }
 0x866   :  { %v900_v3 = vadd.f32 %v2018_v61, %v899_v2 }
 0x867   :  { %v911_v6 = vmul.f32 0.044715, %v905_v63  ;;  %v909_v17 = vmul.f32 0.5, %v905_v63 }
 0x868   :  { %v910_v7 = vmul.f32 0.044715, %v900_v3  ;;  %v908_v15 = vmul.f32 0.5, %v900_v3 }
 0x869   :  { %v913_v8 = vmul.f32 %v911_v6, %v905_v63 }
 0x86a   :  { %v912_v9 = vmul.f32 %v910_v7, %v900_v3 }
 0x86b   :  { %v915_v10 = vmul.f32 %v913_v8, %v905_v63 }
 0x86c   :  { %v914_v39 = vmul.f32 %v912_v9, %v900_v3 }
 0x86d   :  { %v917_v1 = vadd.f32 %v915_v10, %v905_v63 }
 0x86e   :  { %v916_v0 = vadd.f32 %v914_v39, %v900_v3 }
 0x86f   :  { %v919_v11 = vmul.f32 0.7978846, %v917_v1 }
 0x870   :  { %v918_v42 = vmul.f32 0.7978846, %v916_v0 }
 0x871   :  { %2553 = vtanh.f32 %v919_v11 }
 0x872   :  { %2555 = vtanh.f32 %v918_v42 }
 0x87b   :  { %v2554_v12 = vpop.eup %2553 }
 0x87c   :  { %v2556_v13 = vpop.eup %2555  ;;  %v923_v14 = vadd.f32 1.0, %v2554_v12 }
 0x87d   :  { %v922_v16 = vadd.f32 1.0, %v2556_v13 }
 0x87e   :  { %v925_v19 = vmul.f32 %v923_v14, %v909_v17 }
 0x87f   :  { %v924_v18 = vmul.f32 %v922_v16, %v908_v15 }
 0x881   :  { %2291 = vmatprep.mubr.f32.mxu1 %v924_v18 }
 0x882   :  { %2292 = vmatmul.mubr.f32.vlgmr.msra.gmra.mrb[16].mxu1 %v925_v19 }
 0x955   :  { %v2293_v21 = vpop.f32.mrb[16].mxu1 }
 0x956   :  { %v1004_v22 = vadd.f32 %v2293_v21, %v2021_v20  ;;  %v998_v23 = vpop.f32.mrb[17].mxu1 }
 0x957   :  { %v999_v24 = vadd.f32 %v2021_v20, %v998_v23 }
 0x958   :  { %v2883_v25 = vadd.f32 %v1004_v22, %v2802_v4 }
 0x959   :  { %v2886_v26 = vadd.f32 %v999_v24, %v2804_v5 }
 0x95a   :  { %v1047_v27 = vsel %vm74_vm0, %v2883_v25, 0.0 }
 0x95b   :  { %1048 = vadd.xlane.f32.xlu1 %v1047_v27  ;;  %v1044_v28 = vsel %vm74_vm0, %v2886_v26, 0.0 }
 0x95c   :  { %1045 = vadd.xlane.f32.xlu0 %v1044_v28 }
 0x9e8   :  { %v1049_v29 = vpop.xlane.xlu1 %1048 }
 0x9e9   :  { %v1051_v30 = vmul.f32 0.03125, %v1049_v29  ;;  %v1046_v31 = vpop.xlane.xlu0 %1045 }
 0x9ea   :  { %v1050_v32 = vmul.f32 0.03125, %v1046_v31 }
 0x9eb   :  { %v1053_v35 = vsub.f32 %v2883_v25, %v1051_v30 }
 0x9ec   :  { %v1052_v4 = vsub.f32 %v2886_v26, %v1050_v32 }
 0x9ed   :  { %v1055_v37 = vmul.f32 %v1053_v35, %v1053_v35 }
 0x9ee   :  { %v1054_v38 = vmul.f32 %v1052_v4, %v1052_v4 }
 0x9ef   :  { %v1059_v5 = vsel %vm74_vm0, %v1055_v37, 0.0 }
 0x9f0   :  { %1060 = vadd.xlane.f32.xlu1 %v1059_v5  ;;  %v1056_v40 = vsel %vm74_vm0, %v1054_v38, 0.0 }
 0x9f1   :  { %1057 = vadd.xlane.f32.xlu0 %v1056_v40 }
 0xa7d   :  { %v1061_v49 = vpop.xlane.xlu1 %1060 }
 0xa7e   :  { %v1063_v50 = vmul.f32 0.03125, %v1061_v49  ;;  %v1058_v51 = vpop.xlane.xlu0 %1057 }
 0xa7f   :  { %v1062_v52 = vmul.f32 0.03125, %v1058_v51 }
 0xa80   :  { %v1065_v53 = vadd.f32 1e-05, %v1063_v50 }
 0xa81   :  { %v1064_v55 = vadd.f32 1e-05, %v1062_v52 }
 0xa82   :  { %2557 = vrsqrt.f32 %v1065_v53 }
 0xa83   :  { %2559 = vrsqrt.f32 %v1064_v55 }
 0xa8c   :  { %v2558_v56 = vpop.eup %2557 }
 0xa8d   :  { %v2560_v57 = vpop.eup %2559  ;;  %v1069_v59 = vmul.f32 %v2558_v56, %v1053_v35 }
 0xa8e   :  { %v1068_v58 = vmul.f32 %v2560_v57, %v1052_v4 }
 0xa90   :  { %2302 = vmatprep.mubr.msk.f32.mxu0 %vm74_vm0, %v1068_v58 }
 0xa91   :  { %2303 = vmatmul.mubr.msk.f32.vlgmr.msra.gmra.mrb[6].mxu0 %vm74_vm0, %v1069_v59 }
 0xb64   :  { %v2304_v61 = vpop.f32.mrb[6].mxu0 }
 0xb65   :  { %v2913_v62 = vadd.f32 %v2304_v61, %v2054_v60  ;;  %v1148_v63 = vpop.f32.mrb[7].mxu0 }
 0xb66   :  { %v2915_v2 = vadd.f32 %v2054_v60, %v1148_v63 }
 0xb67   :  { %1268 = vrot.lane.b32.xlu1 %v2913_v62, %s2626_s28  ;;  %v1158_v39 = vmul.f32 %v2913_v62, %v2700_v41  ;;  %v1160_v1 = vmul.f32 %v2913_v62, %v2689_v33  ;;  %v1162_v0 = vmul.f32 %v2913_v62, %v2691_v34  ;;  %v1164_v11 = vmul.f32 %v2913_v62, %v2693_v36 }
 0xb68   :  { %1166 = vrot.lane.b32.xlu0 %v2915_v2, %s2626_s28  ;;  %v1157_v3 = vmul.f32 %v2915_v2, %v2700_v41  ;;  %v1159_v8 = vmul.f32 %v2915_v2, %v2689_v33  ;;  %v1161_v9 = vmul.f32 %v2915_v2, %v2691_v34  ;;  %v1163_v10 = vmul.f32 %v2915_v2, %v2693_v36 }
 0xb6a   :  { %2307 = vmatprep.mubr.msk.f32.mxu0 %vm74_vm0, %v1157_v3 }
 0xbd9   :  { %v1269_v7 = vpop.permute.xlu1 %1268 }
 0xbda   :  { %v1167_v6 = vpop.permute.xlu0 %1166 }
 0xbdb   :  { %2305 = vmatprep.subr.msk.mxu0 %vm74_vm0, %v1167_v6 }
 0xbdc   :  { %2306 = vmatpush3.xpose.msk.msra.mxu0 %vm74_vm0, %v1167_v6 }
 0xbdd   :  { %2313 = vmatprep.subr.msk.mxu0 %vm74_vm0, %v1269_v7 }
 0xbdf   :  { %2308 = vmatmul.mubr.msk.f32.vlgmr.msra.gmra.mrb[8].mxu0 %vm74_vm0, %v1159_v8 }
 0xbe0   :  { %2310 = vmatprep.mubr.msk.f32.mxu0 %vm74_vm0, %v1161_v9  ;;  %2314 = vmatpush3.xpose.msk.msra.mxu0 %vm74_vm0, %v1269_v7 }
 0xbe3   :  { %2311 = vmatmul.mubr.msk.f32.gmra.mrb[10].mxu0 %vm74_vm0, %v1163_v10 }
 0xbe4   :  { %2315 = vmatprep.mubr.msk.f32.mxu0 %vm74_vm0, %v1158_v39 }
 0xbe7   :  { %2316 = vmatmul.mubr.msk.f32.vlgmr.msra.gmra.mrb[12].mxu0 %vm74_vm0, %v1160_v1 }
 0xbe8   :  { %2318 = vmatprep.mubr.msk.f32.mxu0 %vm74_vm0, %v1162_v0 }
 0xbeb   :  { %2319 = vmatmul.mubr.msk.f32.gmra.mrb[14].mxu0 %vm74_vm0, %v1164_v11 }
 0xcb2   :  { %v2309_v42 = vpop.f32.mrb[8].mxu0 }
 0xcb3   :  { %v1254_v12 = vadd.f32 %v2309_v42, %v2737_v54  ;;  %v1248_v13 = vpop.f32.mrb[9].mxu0 }
 0xcb4   :  { %v1249_v14 = vadd.f32 %v1248_v13, %v2737_v54 }
 0xcb5   :  { %v1372_v15 = vsel %vm401_vm12, %v1254_v12, -inf }
 0xcb6   :  { %1373 = vmax.xlane.f32.xlu0 %v1372_v15  ;;  %v2312_v16 = vpop.f32.mrb[10].mxu0  ;;  %v1369_v17 = vsel %vm401_vm12, %v1249_v14, -inf }
 0xcb7   :  { %v1264_v18 = vadd.f32 %v2312_v16, %v2737_v54  ;;  %v1258_v19 = vpop.f32.mrb[11].mxu0  ;;  %1370 = vmax.xlane.f32.xlu1 %v1369_v17 }
 0xcb8   :  { %v1259_v20 = vadd.f32 %v1258_v19, %v2737_v54 }
 0xcb9   :  { %v1378_v21 = vsel %vm401_vm12, %v1264_v18, -inf }
 0xcba   :  { %v2317_v22 = vpop.f32.mrb[12].mxu0  ;;  %v1375_v23 = vsel %vm401_vm12, %v1259_v20, -inf }
 0xcbb   :  { %v1356_v24 = vadd.f32 %v2317_v22, %v2737_v54  ;;  %v1350_v27 = vpop.f32.mrb[13].mxu0  ;;  %1376 = vmax.xlane.f32.xlu0 %v1375_v23  ;;  %1379 = vmax.xlane.f32.xlu1 %v1378_v21 }
 0xcbc   :  { %v1351_v28 = vadd.f32 %v1350_v27, %v2737_v54 }
 0xcbd   :  { %v1384_v29 = vsel %vm401_vm12, %v1356_v24, -inf }
 0xcbe   :  { %v2320_v30 = vpop.f32.mrb[14].mxu0  ;;  %v1381_v31 = vsel %vm401_vm12, %v1351_v28, -inf }
 0xcbf   :  { %v1366_v32 = vadd.f32 %v2320_v30, %v2737_v54  ;;  %v1360_v35 = vpop.f32.mrb[15].mxu0  ;;  %1382 = vmax.xlane.f32.xlu0 %v1381_v31  ;;  %1385 = vmax.xlane.f32.xlu1 %v1384_v29 }
 0xcc0   :  { %v1361_v4 = vadd.f32 %v1360_v35, %v2737_v54 }
 0xcc1   :  { %v1390_v37 = vsel %vm401_vm12, %v1366_v32, -inf }
 0xcc2   :  { %v1387_v38 = vsel %vm401_vm12, %v1361_v4, -inf }
 0xcc3   :  { %1388 = vmax.xlane.f32.xlu0 %v1387_v38  ;;  %1391 = vmax.xlane.f32.xlu1 %v1390_v37 }
 0xd43   :  { %v1374_v5 = vpop.xlane.xlu0 %1373 }
 0xd44   :  { %v1394_v40 = vsub.f32 %v1254_v12, %v1374_v5  ;;  %v1371_v43 = vpop.xlane.xlu1 %1370 }
 0xd45   :  { %v1393_v44 = vsub.f32 %v1249_v14, %v1371_v43 }
 0xd46   :  { %v1403_v45 = vmul.f32 1.442695, %v1394_v40 }
 0xd47   :  { %v1401_v46 = vmul.f32 1.442695, %v1393_v44 }
 0xd48   :  { %2561 = vpow2.f32 %v1403_v45  ;;  %v1377_v47 = vpop.xlane.xlu0 %1376  ;;  %v1380_v48 = vpop.xlane.xlu1 %1379 }
 0xd49   :  { %2563 = vpow2.f32 %v1401_v46  ;;  %v1395_v49 = vsub.f32 %v1259_v20, %v1377_v47  ;;  %v1396_v50 = vsub.f32 %v1264_v18, %v1380_v48 }
 0xd4b   :  { %v1405_v51 = vmul.f32 1.442695, %v1395_v49  ;;  %v1407_v54 = vmul.f32 1.442695, %v1396_v50  ;;  %v2026_v49 = vld [vmem:[%s3109_s1 + $0x68] sm:$0xff]  ;;  %v2027_v50 = vld [vmem:[%s3109_s1 + $0x80] sm:$0xff] }
 0xd4c   :  { %v1383_v52 = vpop.xlane.xlu0 %1382  ;;  %v1386_v53 = vpop.xlane.xlu1 %1385 }
 0xd4d   :  { %2565 = vpow2.f32 %v1405_v51  ;;  %v1397_v55 = vsub.f32 %v1351_v28, %v1383_v52  ;;  %v1398_v56 = vsub.f32 %v1356_v24, %v1386_v53  ;;  %v2458_v51 = vpack.c.bf16 %v2027_v50, %v2026_v49  ;;  %v2029_v52 = vld [vmem:[%s3109_s1 + $0xb0] sm:$0xff] }
 0xd4e   :  { %2567 = vpow2.f32 %v1407_v54  ;;  %v2028_v54 = vld [vmem:[%s3109_s1 + $0x98] sm:$0xff] }
 0xd4f   :  { %v1409_v57 = vmul.f32 1.442695, %v1397_v55  ;;  %v1411_v58 = vmul.f32 1.442695, %v1398_v56  ;;  %v2462_v53 = vpack.c.bf16 %v2029_v52, %v2028_v54  ;;  %v2037_v54 = vld [vmem:[%s3110_s2 + $0x98] sm:$0xff] }
 0xd50   :  { %v1389_v59 = vpop.xlane.xlu0 %1388  ;;  %v1392_v60 = vpop.xlane.xlu1 %1391 }
 0xd51   :  { %2569 = vpow2.f32 %v1409_v57  ;;  %v1399_v61 = vsub.f32 %v1361_v4, %v1389_v59  ;;  %v1400_v63 = vsub.f32 %v1366_v32, %v1392_v60 }
 0xd52   :  { %v2562_v3 = vpop.eup %2561  ;;  %2571 = vpow2.f32 %v1411_v58 }
 0xd53   :  { %v2564_v6 = vpop.eup %2563  ;;  %v1413_v7 = vmul.f32 1.442695, %v1399_v61  ;;  %v1415_v8 = vmul.f32 1.442695, %v1400_v63  ;;  %v1420_v9 = vsel %vm401_vm12, %v2562_v3, 0.0 }
 0xd54   :  { %1421 = vadd.xlane.f32.xlu1 %v1420_v9  ;;  %v1417_v10 = vsel %vm401_vm12, %v2564_v6, 0.0 }
 0xd55   :  { %2573 = vpow2.f32 %v1413_v7  ;;  %1418 = vadd.xlane.f32.xlu0 %v1417_v10 }
 0xd56   :  { %2575 = vpow2.f32 %v1415_v8 }
 0xd57   :  { %v2566_v39 = vpop.eup %2565 }
 0xd58   :  { %v2568_v1 = vpop.eup %2567  ;;  %v1423_v0 = vsel %vm401_vm12, %v2566_v39, 0.0 }
 0xd59   :  { %1424 = vadd.xlane.f32.xlu0 %v1423_v0  ;;  %v1426_v11 = vsel %vm401_vm12, %v2568_v1, 0.0 }
 0xd5a   :  { %1427 = vadd.xlane.f32.xlu1 %v1426_v11 }
 0xd5b   :  { %v2570_v42 = vpop.eup %2569 }
 0xd5c   :  { %v2572_v12 = vpop.eup %2571  ;;  %v1429_v13 = vsel %vm401_vm12, %v2570_v42, 0.0 }
 0xd5d   :  { %1430 = vadd.xlane.f32.xlu0 %v1429_v13  ;;  %v1432_v14 = vsel %vm401_vm12, %v2572_v12, 0.0 }
 0xd5e   :  { %1433 = vadd.xlane.f32.xlu1 %v1432_v14 }
 0xd5f   :  { %v2574_v15 = vpop.eup %2573 }
 0xd60   :  { %v2576_v16 = vpop.eup %2575  ;;  %v1435_v17 = vsel %vm401_vm12, %v2574_v15, 0.0 }
 0xd61   :  { %1436 = vadd.xlane.f32.xlu0 %v1435_v17  ;;  %v1438_v18 = vsel %vm401_vm12, %v2576_v16, 0.0 }
 0xd62   :  { %1439 = vadd.xlane.f32.xlu1 %v1438_v18 }
 0xd73   :  { %1557 = vrot.lane.b32.xlu1 %v2913_v62, %s2628_s29 }
 0xd77   :  { %1457 = vrot.lane.b32.xlu0 %v2915_v2, %s2628_s29 }
 0xde1   :  { %v1422_v19 = vpop.xlane.xlu1 %1421 }
 0xde2   :  { %v1419_v20 = vpop.xlane.xlu0 %1418 }
 0xde3   :  { %2577 = vrcp.f32 %v1419_v20 }
 0xde4   :  { %2579 = vrcp.f32 %v1422_v19 }
 0xde6   :  { %v1425_v21 = vpop.xlane.xlu0 %1424 }
 0xde7   :  { %2581 = vrcp.f32 %v1425_v21  ;;  %v1428_v22 = vpop.xlane.xlu1 %1427 }
 0xde8   :  { %2583 = vrcp.f32 %v1428_v22 }
 0xdea   :  { %v1431_v23 = vpop.xlane.xlu0 %1430 }
 0xdeb   :  { %2585 = vrcp.f32 %v1431_v23  ;;  %v1434_v24 = vpop.xlane.xlu1 %1433 }
 0xdec   :  { %2587 = vrcp.f32 %v1434_v24 }
 0xded   :  { %v2578_v27 = vpop.eup %2577 }
 0xdee   :  { %v1437_v28 = vpop.xlane.xlu0 %1436  ;;  %v1449_v29 = vmul.f32 %v2578_v27, %v2564_v6  ;;  %v2580_v30 = vpop.eup %2579 }
 0xdef   :  { %2589 = vrcp.f32 %v1437_v28  ;;  %v1440_v62 = vpop.xlane.xlu1 %1439  ;;  %v1450_v32 = vmul.f32 %v2580_v30, %v2562_v3  ;;  %v2031_v30 = vld [vmem:[%s3109_s1 + $0x88] sm:$0xff] }
 0xdf0   :  { %2591 = vrcp.f32 %v1440_v62  ;;  %2323 = vmatprep.mubr.msk.f32.mxu0 %vm401_vm12, %v1449_v29  ;;  %v2030_v62 = vld [vmem:[%s3109_s1 + $0x70] sm:$0xff] }
 0xdf1   :  { %v2582_v2 = vpop.eup %2581 }
 0xdf2   :  { %v1458_v31 = vpop.permute.xlu0 %1457  ;;  %v2584_v4 = vpop.eup %2583  ;;  %v1451_v37 = vmul.f32 %v2582_v2, %v2566_v39  ;;  %v2466_v2 = vpack.c.bf16 %v2031_v30, %v2030_v62  ;;  %v2081_v30 = vld [vmem:[%s3111_s3 + $0x7] ss:$0 sm:$0xff] }
 0xdf3   :  { %v1558_v35 = vpop.permute.xlu1 %1557  ;;  %2321 = vmatprep.subr.mxu0 %v1458_v31  ;;  %v1452_v44 = vmul.f32 %v2584_v4, %v2568_v1  ;;  %v2034_v4 = vld [vmem:[%s3110_s2 + $0x80] sm:$0xff] }
 0xdf4   :  { %2329 = vmatprep.subr.mxu1 %v1558_v35  ;;  %2322 = vmatpush3.msra.mxu0 %v1458_v31  ;;  %v2032_v31 = vld [vmem:[%s3109_s1 + $0xa0] sm:$0xff] }
 0xdf5   :  { %v2586_v38 = vpop.eup %2585  ;;  %2330 = vmatpush3.msra.mxu1 %v1558_v35  ;;  %2324 = vmatmul.mubr.msk.f32.vlgmr.msra.gmra.mrb[16].mxu0 %vm401_vm12, %v1450_v32  ;;  %v2033_v32 = vld [vmem:[%s3109_s1 + $0xb8] sm:$0xff] }
 0xdf6   :  { %v2588_v5 = vpop.eup %2587  ;;  %2326 = vmatprep.mubr.msk.f32.mxu0 %vm401_vm12, %v1451_v37  ;;  %v1453_v40 = vmul.f32 %v2586_v38, %v2570_v42  ;;  %2459 = vmatprep.subr.bf16.mxu0 %v2458_v51  ;;  %v2470_v35 = vpack.c.bf16 %v2033_v32, %v2032_v31  ;;  %v2035_v37 = vld [vmem:[%s3110_s2 + $0x88] sm:$0xff] }
 0xdf7   :  { %v1454_v43 = vmul.f32 %v2588_v5, %v2572_v12  ;;  %2461 = vmatpush3.bf16.msra.mxu0 %v2458_v51  ;;  %2467 = vmatprep.subr.bf16.mxu1 %v2466_v2  ;;  %v2474_v38 = vpack.c.bf16 %v2035_v37, %v2034_v4  ;;  %v2036_v51 = vld [vmem:[%s3110_s2 + $0x90] sm:$0xff] }
 0xdf8   :  { %2331 = vmatprep.mubr.msk.f32.mxu1 %vm401_vm12, %v1453_v40  ;;  %2463 = vmatprep.subr.bf16.mxu0 %v2462_v53  ;;  %v2478_v52 = vpack.c.bf16 %v2037_v54, %v2036_v51 }
 0xdf9   :  { %v2590_v45 = vpop.eup %2589  ;;  %2327 = vmatmul.mubr.msk.f32.gmra.mrb[18].mxu0 %vm401_vm12, %v1452_v44  ;;  %2332 = vmatmul.mubr.msk.f32.vlgmr.msra.gmra.mrb[18].mxu1 %vm401_vm12, %v1454_v43 }
 0xdfa   :  { %v2592_v46 = vpop.eup %2591  ;;  %v1455_v47 = vmul.f32 %v2590_v45, %v2574_v15  ;;  %2469 = vmatpush3.bf16.msra.mxu1 %v2466_v2 }
 0xdfb   :  { %v1456_v48 = vmul.f32 %v2592_v46, %v2576_v16  ;;  %2465 = vmatpush3.bf16.msra.mxu0 %v2462_v53  ;;  %2471 = vmatprep.subr.bf16.mxu1 %v2470_v35  ;;  %v2038_v53 = vld [vmem:[%s3110_s2 + $0xa0] sm:$0xff] }
 0xdfc   :  { %2334 = vmatprep.mubr.msk.f32.mxu1 %vm401_vm12, %v1455_v47  ;;  %2475 = vmatprep.subr.bf16.mxu0 %v2474_v38 }
 0xdfd   :  { %2335 = vmatmul.mubr.msk.f32.gmra.mrb[20].mxu1 %vm401_vm12, %v1456_v48 }
 0xdfe   :  { %2473 = vmatpush3.bf16.msra.mxu1 %v2470_v35 }
 0xec8   :  { %v2325_v55 = vpop.f32.mrb[16].mxu0 }
 0xec9   :  { %v1659_v56 = vmul.f32 %v2325_v55, %v2689_v33  ;;  %v1538_v57 = vpop.f32.mrb[17].mxu0  ;;  %v2039_v55 = vld [vmem:[%s3110_s2 + $0xa8] sm:$0xff] }
 0xeca   :  { %v1657_v58 = vmul.f32 %v1538_v57, %v2700_v41  ;;  %v2040_v57 = vld [vmem:[%s3110_s2 + $0xb0] sm:$0xff] }
 0xecc   :  { %v1661_v59 = vadd.f32 %v1659_v56, %v1657_v58  ;;  %v2328_v60 = vpop.f32.mrb[18].mxu0  ;;  %v2333_v61 = vpop.f32.mrb[18].mxu1  ;;  %v2482_v56 = vpack.c.bf16 %v2039_v55, %v2038_v53  ;;  %v2041_v58 = vld [vmem:[%s3110_s2 + $0xb8] sm:$0xff] }
 0xecd   :  { %v1660_v63 = vmul.f32 %v2333_v61, %v2689_v33  ;;  %v1548_v3 = vpop.f32.mrb[19].mxu0  ;;  %v1638_v6 = vpop.f32.mrb[19].mxu1  ;;  %v1667_v9 = vmul.f32 %v2328_v60, %v2693_v36  ;;  %v2042_v60 = vld [vmem:[%s3110_s2 + $0xc0] sm:$0xff]  ;;  %v2043_v61 = vld [vmem:[%s3110_s2 + $0xc8] sm:$0xff] }
 0xece   :  { %v1663_v7 = vmul.f32 %v1548_v3, %v2691_v34  ;;  %v1658_v8 = vmul.f32 %v1638_v6, %v2700_v41  ;;  %v2077_v41 = vld [vmem:[%s3111_s3 + $0x5] ss:$0 sm:$0xff]  ;;  %v2044_v3 = vld [vmem:[%s3110_s2 + $0xd0] sm:$0xff]  ;;  %v2045_v6 = vld [vmem:[%s3110_s2 + $0xd8] sm:$0xff] }
 0xed0   :  { %v1665_v10 = vadd.f32 %v1663_v7, %v1661_v59  ;;  %v1662_v39 = vadd.f32 %v1660_v63, %v1658_v8  ;;  %v2336_v1 = vpop.f32.mrb[20].mxu1  ;;  %v2486_v59 = vpack.c.bf16 %v2041_v58, %v2040_v57  ;;  %v2490_v63 = vpack.c.bf16 %v2043_v61, %v2042_v60  ;;  %v2046_v8 = vld [vmem:[%s3110_s2 + $0xe0] sm:$0xff] }
 0xed1   :  { %v1648_v0 = vpop.f32.mrb[21].mxu1  ;;  %v1668_v12 = vmul.f32 %v2336_v1, %v2693_v36  ;;  %v2494_v7 = vpack.c.bf16 %v2045_v6, %v2044_v3  ;;  %v2049_v1 = vld [vmem:[%s3110_s2 + $0xf8] sm:$0xff] }
 0xed2   :  { %v1669_v11 = vadd.f32 %v1667_v9, %v1665_v10  ;;  %v1664_v42 = vmul.f32 %v1648_v0, %v2691_v34  ;;  %v2047_v9 = vld [vmem:[%s3110_s2 + $0xe8] sm:$0xff] }
 0xed3   :  { %v2498_v10 = vpack.c.bf16 %v2047_v9, %v2046_v8 }
 0xed4   :  { %v1666_v13 = vadd.f32 %v1664_v42, %v1662_v39  ;;  %2345 = vmatprep.mubr.msk.f32.mxu0 %vm74_vm0, %v1669_v11  ;;  %v2048_v39 = vld [vmem:[%s3110_s2 + $0xf0] sm:$0xff]  ;;  %v2078_v11 = vld [vmem:[%s3111_s3 + $0x6] ss:$0 sm:$0xff] }
 0xed5   :  { %v2502_v0 = vpack.c.bf16 %v2049_v1, %v2048_v39 }
 0xed6   :  { %v1670_v33 = vadd.f32 %v1668_v12, %v1666_v13 }
 0xed8   :  { %2346 = vmatmul.mubr.msk.f32.vlgmr.msra.gmra.mrb[20].mxu0 %vm74_vm0, %v1670_v33 }
 0xed9   :  { %2477 = vmatpush3.bf16.msra.mxu0 %v2474_v38 }
 0xeda   :  { %2479 = vmatprep.subr.bf16.mxu0 %v2478_v52 }
 0xedd   :  { %2481 = vmatpush3.bf16.msra.mxu0 %v2478_v52 }
 0xede   :  { %2483 = vmatprep.subr.bf16.mxu0 %v2482_v56 }
 0xee1   :  { %2485 = vmatpush3.bf16.msra.mxu0 %v2482_v56 }
 0xee2   :  { %2487 = vmatprep.subr.bf16.mxu0 %v2486_v59 }
 0xee5   :  { %2489 = vmatpush3.bf16.msra.mxu0 %v2486_v59 }
 0xee6   :  { %2491 = vmatprep.subr.bf16.mxu0 %v2490_v63 }
 0xee9   :  { %2493 = vmatpush3.bf16.msra.mxu0 %v2490_v63 }
 0xeea   :  { %2495 = vmatprep.subr.bf16.mxu0 %v2494_v7 }
 0xeed   :  { %2497 = vmatpush3.bf16.msra.mxu0 %v2494_v7 }
 0xeee   :  { %2499 = vmatprep.subr.bf16.mxu0 %v2498_v10 }
 0xef1   :  { %2501 = vmatpush3.bf16.msra.mxu0 %v2498_v10 }
 0xef2   :  { %2503 = vmatprep.subr.bf16.mxu0 %v2502_v0 }
 0xef5   :  { %2505 = vmatpush3.bf16.msra.mxu0 %v2502_v0 }
 0xfab   :  { %v2347_v14 = vpop.f32.mrb[20].mxu0 }
 0xfac   :  { %v1753_v15 = vadd.f32 %v2347_v14, %v2883_v25  ;;  %v1743_v16 = vpop.f32.mrb[21].mxu0 }
 0xfad   :  { %v1752_v17 = vadd.f32 %v1743_v16, %v2886_v26 }
 0xfae   :  { %v3012_v18 = vadd.f32 %v2077_v41, %v1753_v15 }
 0xfaf   :  { %v3014_v34 = vadd.f32 %v2077_v41, %v1752_v17 }
 0xfb0   :  { %v1765_v36 = vsel %vm74_vm0, %v3012_v18, 0.0 }
 0xfb1   :  { %1766 = vadd.xlane.f32.xlu0 %v1765_v36  ;;  %v1762_v19 = vsel %vm74_vm0, %v3014_v34, 0.0 }
 0xfb2   :  { %1763 = vadd.xlane.f32.xlu1 %v1762_v19 }
0x103e   :  { %v1767_v20 = vpop.xlane.xlu0 %1766 }
0x103f   :  { %v1769_v21 = vmul.f32 0.03125, %v1767_v20  ;;  %v1764_v22 = vpop.xlane.xlu1 %1763 }
0x1040   :  { %v1768_v23 = vmul.f32 0.03125, %v1764_v22 }
0x1041   :  { %v1771_v25 = vsub.f32 %v3012_v18, %v1769_v21 }
0x1042   :  { %v1770_v26 = vsub.f32 %v3014_v34, %v1768_v23 }
0x1043   :  { %v1773_v24 = vmul.f32 %v1771_v25, %v1771_v25 }
0x1044   :  { %v1772_v27 = vmul.f32 %v1770_v26, %v1770_v26 }
0x1045   :  { %v1777_v28 = vsel %vm74_vm0, %v1773_v24, 0.0 }
0x1046   :  { %1778 = vadd.xlane.f32.xlu1 %v1777_v28  ;;  %v1774_v29 = vsel %vm74_vm0, %v1772_v27, 0.0 }
0x1047   :  { %1775 = vadd.xlane.f32.xlu0 %v1774_v29 }
0x10d3   :  { %v1779_v5 = vpop.xlane.xlu1 %1778 }
0x10d4   :  { %v1781_v40 = vmul.f32 0.03125, %v1779_v5  ;;  %v1776_v43 = vpop.xlane.xlu0 %1775 }
0x10d5   :  { %v1780_v44 = vmul.f32 0.03125, %v1776_v43 }
0x10d6   :  { %v1783_v45 = vadd.f32 1e-05, %v1781_v40 }
0x10d7   :  { %v1782_v46 = vadd.f32 1e-05, %v1780_v44 }
0x10d8   :  { %2593 = vrsqrt.f32 %v1783_v45 }
0x10d9   :  { %2595 = vrsqrt.f32 %v1782_v46 }
0x10e2   :  { %v2594_v47 = vpop.eup %2593 }
0x10e3   :  { %v2596_v48 = vpop.eup %2595  ;;  %v1787_v50 = vmul.f32 %v2594_v47, %v1771_v25 }
0x10e4   :  { %v1786_v49 = vmul.f32 %v2596_v48, %v1770_v26 }
0x10e6   :  { %2356 = vmatprep.mubr.msk.f32.mxu1 %vm74_vm0, %v1786_v49 }
0x10e7   :  { %2357 = vmatmul.mubr.msk.f32.vlgmr.msra.gmra.mrb[22].mxu1 %vm74_vm0, %v1787_v50 }
0x11ba   :  { %v2358_v42 = vpop.f32.mrb[22].mxu1 }
0x11bb   :  { %v1872_v12 = vadd.f32 %v2358_v42, %v2078_v11  ;;  %v1866_v13 = vpop.f32.mrb[23].mxu1 }
0x11bc   :  { %v1867_v33 = vadd.f32 %v2078_v11, %v1866_v13 }
0x11bd   :  { %v1878_v41 = vmul.f32 0.044715, %v1872_v12  ;;  %v1876_v28 = vmul.f32 0.5, %v1872_v12 }
0x11be   :  { %v1877_v14 = vmul.f32 0.044715, %v1867_v33  ;;  %v1875_v24 = vmul.f32 0.5, %v1867_v33 }
0x11bf   :  { %v1880_v15 = vmul.f32 %v1878_v41, %v1872_v12 }
0x11c0   :  { %v1879_v16 = vmul.f32 %v1877_v14, %v1867_v33 }
0x11c1   :  { %v1882_v17 = vmul.f32 %v1880_v15, %v1872_v12 }
0x11c2   :  { %v1881_v36 = vmul.f32 %v1879_v16, %v1867_v33 }
0x11c3   :  { %v1884_v19 = vadd.f32 %v1882_v17, %v1872_v12 }
0x11c4   :  { %v1883_v20 = vadd.f32 %v1881_v36, %v1867_v33 }
0x11c5   :  { %v1886_v21 = vmul.f32 0.7978846, %v1884_v19 }
0x11c6   :  { %v1885_v22 = vmul.f32 0.7978846, %v1883_v20 }
0x11c7   :  { %2597 = vtanh.f32 %v1886_v21 }
0x11c8   :  { %2599 = vtanh.f32 %v1885_v22 }
0x11d1   :  { %v2598_v23 = vpop.eup %2597 }
0x11d2   :  { %v2600_v25 = vpop.eup %2599  ;;  %v1890_v26 = vadd.f32 1.0, %v2598_v23 }
0x11d3   :  { %v1889_v27 = vadd.f32 1.0, %v2600_v25 }
0x11d4   :  { %v1892_v62 = vmul.f32 %v1890_v26, %v1876_v28 }
0x11d5   :  { %v1891_v29 = vmul.f32 %v1889_v27, %v1875_v24 }
0x11d7   :  { %2391 = vmatprep.mubr.f32.mxu0 %v1891_v29 }
0x11d8   :  { %2392 = vmatmul.mubr.f32.vlgmr.msra.gmra.mrb[22].mxu0 %v1892_v62 }
0x12ab   :  { %v2393_v2 = vpop.f32.mrb[22].mxu0 }
0x12ac   :  { %v1971_v31 = vadd.f32 %v2393_v2, %v2081_v30  ;;  %v1965_v32 = vpop.f32.mrb[23].mxu0 }
0x12ad   :  { %v1966_v35 = vadd.f32 %v2081_v30, %v1965_v32 }
0x12ae   :  { %v1975_v4 = vadd.f32 %v1971_v31, %v3012_v18 }
0x12af   :  { %v1974_v37 = vadd.f32 %v1966_v35, %v3014_v34 }
0x12b0   :  { %1977 = vst.msk [vmem:[#allocation2 + $0x8] sm:$0xff] %vm74_vm0, %v1975_v4 }
0x12b1   :  { %1976 = vst.msk [vmem:[#allocation2] sm:$0xff] %vm74_vm0, %v1974_v37 }
0x12b2   :  { %2612 = shalt.err (!%p2609_p4)
}
0x12b3   :  { %s2613_s29 = scalar_lea.hbm %s3112_s4, 256 }
0x12b4   :  { %p2614_p5 = scmp.ne.s32.totalorder %s3112_s4, %s2613_s29  ;;  %p2617_p6 = scmp.lt.u32.totalorder %s2613_s29, %s3112_s4 }
0x12b6   :  { %p2619_p7 = pnand %p2617_p6, %p2614_p5 }
0x12b8   :  { %2622 = shalt.err (!%p2619_p7)
}
0x12b9   :  { %s2630_s21 = smov 128   ;;  %s2631_s22 = smov 8  }
0x12ba   :  { %1989 = dma.vmem_to_hbm [thread:$0]  %s1984_s16, 256, %s3112_s4, [#allocation3], %s2630_s21, %s2630_s21, %s2631_s22  }
0x12bb   :  { %2623 = dma.done.wait [#allocation3], 256  }
0x12bc   :  { %2624 = vsyncadd [#allocation3], 4294967040 }
0x12bd   :  { %1993 = vsyncpa [#allocation3], 1 }

</bundles_post_ra>
